<compile_context>
chip_gen: v7x
topology: tpu7x:2x2x1
jax: 0.10.0
libtpu: 0.0.40
codegen_flags: <defaults>
</compile_context>

<pallas_src>
import functools

import jax
import jax.numpy as jnp
from jax import lax
from jax.experimental import pallas as pl
from jax.experimental.pallas import tpu as pltpu


USE_BF16_MATMUL = True  # MXU operands bf16; accumulation and state stay f32.
_MATMUL_DTYPE = jnp.bfloat16 if USE_BF16_MATMUL else jnp.float32


# ----------------------------------------------------------------------------
# helpers
# ----------------------------------------------------------------------------
def _round_up(x, m):
    return (x + m - 1) // m * m


def _dtype_bytes(dt):
    return jnp.dtype(dt).itemsize


def _tpu_vmem_bytes():
    """Physical per-core VMEM; conservative 64 MiB (v7x) fallback."""
    try:
        return int(pltpu.get_tpu_info().vmem_capacity_bytes)
    except Exception:
        return 64 << 20


def _vmem_limit(est_bytes, vmem_cap):
    hi = int(vmem_cap * 0.75)
    return int(min(max(est_bytes + (8 << 20), 16 << 20), hi))


def _choose_time_chunk(t, bblk, f, hp, vmem_cap):
    """Pick Tc from the per-generation VMEM budget (never shrink Bblk/Hp)."""
    xb = _dtype_bytes(_MATMUL_DTYPE)
    wb = _dtype_bytes(_MATMUL_DTYPE)
    g3 = 3 * hp
    # Resident / double-buffered fixed cost (weights, biases, h scratch).
    fixed = 2 * (f * g3 * wb + hp * g3 * wb + g3 * 4 + hp * 4) + bblk * hp * 4
    # Per-time-step cost: x block (double-buffered), out block (double-
    # buffered), gates scratch (single).
    per_step = bblk * (2 * f * xb + 2 * hp * 4 + g3 * 4)
    budget = max(8 << 20, min(int(vmem_cap * 0.35), 32 << 20))
    tc = (budget - fixed) // per_step if budget > fixed else 1
    return int(max(1, min(tc, t, 128)))


# ----------------------------------------------------------------------------
# Fused GRU chunk kernel: input projection + recurrence in one pallas_call.
#   grid = (num_dir, num_batch_blocks, T_pad // Tc)
#   PyTorch GRU cell (b_ir+b_hr, b_iz+b_hz folded into the projection bias):
#     r = sigmoid(x_r + h W_hr)
#     z = sigmoid(x_z + h W_hz)
#     n = tanh  (x_n + r * (h W_hn + b_hn))
#     h' = (1 - z) * n + z * h        (written as n + z*(h - n))
# ----------------------------------------------------------------------------
def _gru_chunk_kernel(x_ref, wih_ref, bproj_ref, whh_ref, bhn_ref, out_ref,
                      gates_ref, h_ref, *, tc, bblk, hp, unroll):
    c = pl.program_id(2)

    @pl.when(c == 0)
    def _():
        h_ref[...] = jnp.zeros_like(h_ref)

    # Fused input projection for the whole chunk: one big lane-dense MXU
    # matmul, result kept in VMEM scratch (no HBM round trip of the gates).
    gates_ref[...] = (
        jnp.dot(x_ref[...], wih_ref[...], preferred_element_type=jnp.float32)
        + bproj_ref[...])

    whh = whh_ref[...]                                   # (Hp, 3Hp) resident
    bhn_b = jnp.broadcast_to(bhn_ref[...], (bblk, hp))   # hoisted: no CSE in loop

    def step(t, h):
        row = pl.multiple_of(t * bblk, bblk)
        xg = gates_ref[pl.ds(row, bblk), :]              # (Bblk, 3Hp)
        g = jnp.dot(h.astype(whh.dtype), whh,
                    preferred_element_type=jnp.float32)  # one MXU pass / step
        r = jax.nn.sigmoid(xg[:, 0 * hp:1 * hp] + g[:, 0 * hp:1 * hp])
        z = jax.nn.sigmoid(xg[:, 1 * hp:2 * hp] + g[:, 1 * hp:2 * hp])
        n = jnp.tanh(xg[:, 2 * hp:3 * hp] + r * (g[:, 2 * hp:3 * hp] + bhn_b))
        h_new = n + z * (h - n)                          # == (1-z)*n + z*h
        out_ref[t] = h_new
        return h_new

    h_ref[...] = lax.fori_loop(0, tc, step, h_ref[...], unroll=unroll)


def _gru_recurrence(x, w_ih, b_proj, w_hh, b_hn, tc, bblk):
    """x: (D, NB, T_pad*bblk, F)  ->  (D, NB, T_pad, bblk, Hp) f32."""
    d, nb, rows, f = x.shape
    t_pad = rows // bblk
    hp = w_hh.shape[1]
    g3 = 3 * hp
    nc = t_pad // tc
    xb = _dtype_bytes(x.dtype)
    wb = _dtype_bytes(w_ih.dtype)
    vmem_cap = _tpu_vmem_bytes()

    est = (2 * (tc * bblk * f * xb + tc * bblk * hp * 4)           # x, out
           + 2 * (f * g3 * wb + hp * g3 * wb + g3 * 4 + hp * 4)    # weights
           + tc * bblk * g3 * 4 + bblk * hp * 4)                   # scratch

    flops = 2 * d * nb * t_pad * bblk * g3 * (f + hp)
    transcendentals = 3 * d * nb * t_pad * bblk * hp
    bytes_accessed = (x.size * xb + d * nb * t_pad * bblk * hp * 4
                      + w_ih.size * wb + w_hh.size * wb
                      + b_proj.size * 4 + b_hn.size * 4)

    kernel = functools.partial(_gru_chunk_kernel, tc=tc, bblk=bblk, hp=hp,
                               unroll=int(min(tc, 8)))
    return pl.pallas_call(
        kernel,
        grid=(d, nb, nc),
        out_shape=jax.ShapeDtypeStruct((d, nb, t_pad, bblk, hp), jnp.float32),
        in_specs=[
            pl.BlockSpec((None, None, tc * bblk, f),
                         lambda di, bi, ci: (di, bi, ci, 0)),
            pl.BlockSpec((None, f, g3), lambda di, bi, ci: (di, 0, 0)),
            pl.BlockSpec((None, 1, g3), lambda di, bi, ci: (di, 0, 0)),
            pl.BlockSpec((None, hp, g3), lambda di, bi, ci: (di, 0, 0)),
            pl.BlockSpec((None, 1, hp), lambda di, bi, ci: (di, 0, 0)),
        ],
        out_specs=pl.BlockSpec((None, None, tc, bblk, hp),
                               lambda di, bi, ci: (di, bi, ci, 0, 0)),
        scratch_shapes=[pltpu.VMEM((tc * bblk, g3), jnp.float32),
                        pltpu.VMEM((bblk, hp), jnp.float32)],
        compiler_params=pltpu.CompilerParams(
            # direction & batch-block axes are independent (megacore / 2-TC
            # shardable); the time-chunk axis carries h -> arbitrary.
            dimension_semantics=("parallel", "parallel", "arbitrary"),
            vmem_limit_bytes=_vmem_limit(est, vmem_cap)),
        cost_estimate=pl.CostEstimate(
            flops=int(flops), transcendentals=int(transcendentals),
            bytes_accessed=int(bytes_accessed)),
    )(x, w_ih, b_proj, w_hh, b_hn)


# ----------------------------------------------------------------------------
# One GRU layer (both directions + all batch blocks in a single pallas_call)
# ----------------------------------------------------------------------------
def _gru_layer(x, lp, hidden_dim, bidirectional):
    """x: (B, T, F) f32 -> (seq (B, T, D*H), last_hidden (B, D*H)), f32."""
    b, t, f = x.shape
    num_dir = 2 if bidirectional else 1
    hp = lp["w_hh"].shape[1]

    # Batch blocking: keep both v7x TensorCores busy even with one direction.
    nb = 1 if (num_dir >= 2 or b <= 8) else 2
    bblk = _round_up(pl.cdiv(b, nb), 8)
    bp = nb * bblk

    tc = _choose_time_chunk(t, bblk, f, hp, _tpu_vmem_bytes())
    t_pad = _round_up(t, tc)

    # Direction-stacked, time-major, padded, bf16 input; then laid out so each
    # kernel block is a plain 2D (Tc*bblk, F) slab (no in-kernel reshapes).
    xc = x.astype(_MATMUL_DTYPE)
    if bidirectional:
        xs = jnp.stack([xc, jnp.flip(xc, axis=1)], axis=0)       # (D, B, T, F)
    else:
        xs = xc[None]
    xs = jnp.transpose(xs, (0, 2, 1, 3))                         # (D, T, B, F)
    xs = jnp.pad(xs, ((0, 0), (0, t_pad - t), (0, bp - b), (0, 0)))
    xs = xs.reshape(num_dir, t_pad, nb, bblk, f)
    xs = jnp.transpose(xs, (0, 2, 1, 3, 4))                      # (D,NB,Tp,bblk,F)
    xs = xs.reshape(num_dir, nb, t_pad * bblk, f)                # free reshape

    out = _gru_recurrence(xs, lp["w_ih"], lp["b_proj"], lp["w_hh"],
                          lp["b_hn"], tc, bblk)       # (D, NB, Tp, bblk, Hp)
    out = jnp.transpose(out, (0, 2, 1, 3, 4)).reshape(num_dir, t_pad, bp, hp)
    out = out[:, :t, :b, :hidden_dim]                            # (D, T, B, H)

    out_f = out[0]
    if bidirectional:
        out_b = jnp.flip(out[1], axis=0)
        seq = jnp.concatenate([out_f, out_b], axis=-1)           # (T, B, 2H)
        last = jnp.concatenate([out_f[-1], out_b[0]], axis=-1)   # (B, 2H)
    else:
        seq = out_f
        last = out_f[-1]
    return jnp.transpose(seq, (1, 0, 2)), last


# ----------------------------------------------------------------------------
# DilatedRNN forward (glue mirrors the PyTorch module exactly)
# ----------------------------------------------------------------------------
def dilated_rnn_forward(x, all_params, hidden_dims, dilation_rates,
                        bidirectional=True):
    assert x.ndim == 3, f"Input must be 3D, got {x.shape}"
    num_dir = 2 if bidirectional else 1
    feats = []
    current = x
    for i, lp in enumerate(all_params):
        d = dilation_rates[i]
        h = hidden_dims[i]
        b, t, f = current.shape
        if d == 1:
            seq, last_hidden = _gru_layer(current, lp, h, bidirectional)
            feats.append(last_hidden)          # == hidden.permute(1,0,2).view
            current = seq
            continue
        pad_len = (d - t % d) % d
        xp = (jnp.pad(current, ((0, 0), (0, pad_len), (0, 0)))
              if pad_len > 0 else current)
        tp = xp.shape[1]
        xi = (xp.reshape(b, tp // d, d, f)
                .transpose(0, 2, 1, 3)
                .reshape(b * d, tp // d, f))
        seq_i, _ = _gru_layer(xi, lp, h, bidirectional)
        hd = h * num_dir
        seq = (seq_i.reshape(b, d, tp // d, hd)
                    .transpose(0, 2, 1, 3)
                    .reshape(b, tp, hd))[:, :t, :]
        feats.append(seq[:, -1, :])
        current = seq
    return jnp.concatenate(feats, axis=1)


# ----------------------------------------------------------------------------
# Parameters: raw (PyTorch-like) init + fused/padded preparation for kernels
# ----------------------------------------------------------------------------
def init_gru_params(key, input_dim, hidden_dim, bidirectional):
    num_dir = 2 if bidirectional else 1
    bound = 1.0 / float(hidden_dim) ** 0.5
    out = []
    for dk in jax.random.split(key, num_dir):
        ks = jax.random.split(dk, 4)
        u = lambda kk, shape: jax.random.uniform(
            kk, shape, jnp.float32, -bound, bound)
        out.append(dict(
            w_ih=u(ks[0], (input_dim, 3 * hidden_dim)),
            b_ih=u(ks[1], (3 * hidden_dim,)),
            w_hh=u(ks[2], (hidden_dim, 3 * hidden_dim)),
            b_hh=u(ks[3], (3 * hidden_dim,)),
        ))
    return out


def init_dilated_rnn_params(key, input_dim, num_layers, hidden_dims,
                            bidirectional):
    num_dir = 2 if bidirectional else 1
    keys = jax.random.split(key, num_layers)
    params = []
    for i in range(num_layers):
        cur_in = input_dim if i == 0 else hidden_dims[i - 1] * num_dir
        params.append(init_gru_params(keys[i], cur_in, hidden_dims[i],
                                      bidirectional))
    return params


def _pad_gate_cols(w, h, hp):
    """Pad each of the 3 gate blocks along the last axis from h to hp."""
    if hp == h:
        return w
    pads = [(0, 0)] * (w.ndim - 1)
    parts = [jnp.pad(w[..., i * h:(i + 1) * h], pads + [(0, hp - h)])
             for i in range(3)]
    return jnp.concatenate(parts, axis=-1)


def prepare_layer_params(raw_dir_params, hidden_dim):
    """Fuse & pad raw per-direction params into stacked kernel params."""
    h = hidden_dim
    hp = _round_up(h, 128)
    w_ih, b_proj, w_hh, b_hn = [], [], [], []
    for p in raw_dir_params:
        w_ih.append(_pad_gate_cols(p["w_ih"], h, hp).astype(_MATMUL_DTYPE))
        # Fold b_hr, b_hz into the input-projection bias; keep b_hn separate.
        bp_raw = jnp.concatenate(
            [p["b_ih"][:2 * h] + p["b_hh"][:2 * h], p["b_ih"][2 * h:]])
        b_proj.append(_pad_gate_cols(bp_raw[None, :], h, hp))
        w_hh.append(_pad_gate_cols(
            jnp.pad(p["w_hh"], ((0, hp - h), (0, 0))), h,
            hp).astype(_MATMUL_DTYPE))
        b_hn.append(jnp.pad(p["b_hh"][2 * h:], (0, hp - h))[None, :])
    return dict(w_ih=jnp.stack(w_ih),      # (D, F, 3Hp)   bf16
                b_proj=jnp.stack(b_proj),  # (D, 1, 3Hp)   f32
                w_hh=jnp.stack(w_hh),      # (D, Hp, 3Hp)  bf16
                b_hn=jnp.stack(b_hn))      # (D, 1, Hp)    f32


# ----------------------------------------------------------------------------
# Pure-JAX reference (mirrors torch.nn.GRU exactly), used as a sanity check
# ----------------------------------------------------------------------------
def _ref_gru_dir(x, p, hd):
    b = x.shape[0]

    def cell(h, xt):
        gi = xt @ p["w_ih"] + p["b_ih"]
        gh = h @ p["w_hh"] + p["b_hh"]
        r = jax.nn.sigmoid(gi[:, :hd] + gh[:, :hd])
        z = jax.nn.sigmoid(gi[:, hd:2 * hd] + gh[:, hd:2 * hd])
        n = jnp.tanh(gi[:, 2 * hd:] + r * gh[:, 2 * hd:])
        h_new = (1.0 - z) * n + z * h
        return h_new, h_new

    h0 = jnp.zeros((b, hd), jnp.float32)
    _, ys = lax.scan(cell, h0, jnp.swapaxes(x, 0, 1))
    return jnp.swapaxes(ys, 0, 1)


def ref_dilated_rnn_forward(x, raw_params, hidden_dims, dilation_rates,
                            bidirectional):
    num_dir = 2 if bidirectional else 1
    feats = []
    cur = x
    for i, lp in enumerate(raw_params):
        d = dilation_rates[i]
        h = hidden_dims[i]
        b, t, f = cur.shape

        def run(xx, lp=lp, h=h):
            of = _ref_gru_dir(xx, lp[0], h)
            if not bidirectional:
                return of, of[:, -1, :]
            ob = jnp.flip(_ref_gru_dir(jnp.flip(xx, 1), lp[1], h), 1)
            return (jnp.concatenate([of, ob], -1),
                    jnp.concatenate([of[:, -1, :], ob[:, 0, :]], -1))

        if d == 1:
            seq, hid = run(cur)
            feats.append(hid)
            cur = seq
            continue
        pad_len = (d - t % d) % d
        xp = jnp.pad(cur, ((0, 0), (0, pad_len), (0, 0))) if pad_len else cur
        tp = xp.shape[1]
        xi = (xp.reshape(b, tp // d, d, f).transpose(0, 2, 1, 3)
                .reshape(b * d, tp // d, f))
        seq_i, _ = run(xi)
        hd = h * num_dir
        seq = (seq_i.reshape(b, d, tp // d, hd).transpose(0, 2, 1, 3)
                    .reshape(b, tp, hd))[:, :t, :]
        feats.append(seq[:, -1, :])
        cur = seq
    return jnp.concatenate(feats, axis=1)


# ----------------------------------------------------------------------------
if __name__ == "__main__":
    batch, seq_len, input_dim = 2, 8, 8
    num_layers = 2
    hidden_dims = [16, 16]
    dilation_rates = [1, 2]
    bidirectional = True

    root = jax.random.PRNGKey(0)
    kx, kp = jax.random.split(root)
    x = jax.random.normal(kx, (batch, seq_len, input_dim), jnp.float32)

    raw_params = init_dilated_rnn_params(kp, input_dim, num_layers,
                                         hidden_dims, bidirectional)
    prepared = [prepare_layer_params(raw_params[i], hidden_dims[i])
                for i in range(num_layers)]

    fwd = jax.jit(functools.partial(
        dilated_rnn_forward, all_params=prepared, hidden_dims=hidden_dims,
        dilation_rates=dilation_rates, bidirectional=bidirectional))
    out = jax.block_until_ready(fwd(x))

    expected = (batch, sum(h * (2 if bidirectional else 1)
                           for h in hidden_dims))
    assert out.shape == expected, out.shape
    assert bool(jnp.all(jnp.isfinite(out)))

    # Sanity check against the pure-JAX f32 reference.  Tolerance is tight for
    # the all-f32 path; relaxed only because bf16 MXU operands are enabled.
    ref = ref_dilated_rnn_forward(x, raw_params, hidden_dims, dilation_rates,
                                  bidirectional)
    tol = 3e-2 if USE_BF16_MATMUL else 1e-4
    assert bool(jnp.allclose(out, ref, rtol=tol, atol=tol)), \
        float(jnp.max(jnp.abs(out - ref)))

    print("KERNEL_OK")
</pallas_src>

<mosaic_0001>
module attributes {stable_mosaic.version = 11 : i64} {
  func.func @_gru_chunk_kernel(%arg0: i32, %arg1: i32, %arg2: i32, %arg3: memref<1x1x64x8xbf16, #tpu.memory_space<vmem>>, %arg4: memref<1x8x384xbf16, #tpu.memory_space<vmem>>, %arg5: memref<1x1x384xf32, #tpu.memory_space<vmem>>, %arg6: memref<1x128x384xbf16, #tpu.memory_space<vmem>>, %arg7: memref<1x1x128xf32, #tpu.memory_space<vmem>>, %arg8: memref<1x1x8x8x128xf32, #tpu.memory_space<vmem>>, %arg9: memref<64x384xf32, #tpu.memory_space<vmem>>, %arg10: memref<8x128xf32, #tpu.memory_space<vmem>>) attributes {dimension_semantics = [#tpu.dimension_semantics<parallel>, #tpu.dimension_semantics<parallel>, #tpu.dimension_semantics<arbitrary>], iteration_bounds = array<i64: 2, 1, 1>, scalar_prefetch = 0 : i64, scratch_operands = 2 : i64, tpu.core_type = #tpu.core_type<tc>, window_params = [{transform_indices = @transform_0, window_bounds = array<i64: 1, 1, 64, 8>}, {transform_indices = @transform_1, window_bounds = array<i64: 1, 8, 384>}, {transform_indices = @transform_2, window_bounds = array<i64: 1, 1, 384>}, {transform_indices = @transform_3, window_bounds = array<i64: 1, 128, 384>}, {transform_indices = @transform_4, window_bounds = array<i64: 1, 1, 128>}, {transform_indices = @transform_5, window_bounds = array<i64: 1, 1, 8, 8, 128>}]} {
    %c0_i32 = arith.constant 0 : i32
    %0 = arith.cmpi eq, %arg2, %c0_i32 : i32
    %1 = arith.extui %0 : i1 to i32
    %c0_i32_0 = arith.constant 0 : i32
    %2 = arith.cmpi ne, %1, %c0_i32_0 : i32
    scf.if %2 {
      %cst_95 = arith.constant 0.000000e+00 : f32
      %301 = vector.broadcast %cst_95 : f32 to vector<8x128xf32>
      %c0_96 = arith.constant 0 : index
      %c0_97 = arith.constant 0 : index
      %302 = vector.load %arg10[%c0_96, %c0_97] : memref<8x128xf32, #tpu.memory_space<vmem>>, vector<8x128xf32>
      tpu.vector_store %arg10[%c0_96, %c0_97], %301 {strides = array<i32>} : memref<8x128xf32, #tpu.memory_space<vmem>>, vector<8x128xf32>,
    } else {
    }
    %c0 = arith.constant 0 : index
    %c0_1 = arith.constant 0 : index
    %c0_2 = arith.constant 0 : index
    %c0_3 = arith.constant 0 : index
    %3 = vector.load %arg3[%c0, %c0_1, %c0_2, %c0_3] : memref<1x1x64x8xbf16, #tpu.memory_space<vmem>>, vector<1x1x64x8xbf16>
    %4 = vector.shape_cast %3 : vector<1x1x64x8xbf16> to vector<64x8xbf16>
    %c0_4 = arith.constant 0 : index
    %c0_5 = arith.constant 0 : index
    %c0_6 = arith.constant 0 : index
    %5 = vector.load %arg4[%c0_4, %c0_5, %c0_6] : memref<1x8x384xbf16, #tpu.memory_space<vmem>>, vector<1x8x384xbf16>
    %6 = vector.shape_cast %5 : vector<1x8x384xbf16> to vector<8x384xbf16>
    %cst = arith.constant dense<0.000000e+00> : vector<64x384xf32>
    %7 = tpu.matmul %4, %6, %cst {dimension_numbers = #tpu.dot_dimension_numbers<[1], [0], [0], [1], [0, 0, 1, 1], [], []>} : vector<64x8xbf16>, vector<8x384xbf16>, vector<64x384xf32> -> vector<64x384xf32>
    %c0_7 = arith.constant 0 : index
    %c0_8 = arith.constant 0 : index
    %c0_9 = arith.constant 0 : index
    %8 = vector.load %arg5[%c0_7, %c0_8, %c0_9] : memref<1x1x384xf32, #tpu.memory_space<vmem>>, vector<1x1x384xf32>
    %9 = vector.shape_cast %8 : vector<1x1x384xf32> to vector<1x384xf32>
    %10 = vector.broadcast %9 : vector<1x384xf32> to vector<64x384xf32>
    %11 = arith.addf %7, %10 : vector<64x384xf32>
    %c0_10 = arith.constant 0 : index
    %c0_11 = arith.constant 0 : index
    %12 = vector.load %arg9[%c0_10, %c0_11] : memref<64x384xf32, #tpu.memory_space<vmem>>, vector<64x384xf32>
    tpu.vector_store %arg9[%c0_10, %c0_11], %11 {strides = array<i32>} : memref<64x384xf32, #tpu.memory_space<vmem>>, vector<64x384xf32>,
    %c0_12 = arith.constant 0 : index
    %c0_13 = arith.constant 0 : index
    %c0_14 = arith.constant 0 : index
    %13 = vector.load %arg6[%c0_12, %c0_13, %c0_14] : memref<1x128x384xbf16, #tpu.memory_space<vmem>>, vector<1x128x384xbf16>
    %14 = vector.shape_cast %13 : vector<1x128x384xbf16> to vector<128x384xbf16>
    %c0_15 = arith.constant 0 : index
    %c0_16 = arith.constant 0 : index
    %c0_17 = arith.constant 0 : index
    %15 = vector.load %arg7[%c0_15, %c0_16, %c0_17] : memref<1x1x128xf32, #tpu.memory_space<vmem>>, vector<1x1x128xf32>
    %16 = vector.shape_cast %15 : vector<1x1x128xf32> to vector<1x128xf32>
    %17 = vector.shape_cast %16 : vector<1x128xf32> to vector<1x128xf32>
    %18 = vector.broadcast %17 : vector<1x128xf32> to vector<8x128xf32>
    %c0_18 = arith.constant 0 : index
    %c0_19 = arith.constant 0 : index
    %19 = vector.load %arg10[%c0_18, %c0_19] : memref<8x128xf32, #tpu.memory_space<vmem>>, vector<8x128xf32>
    %c0_i32_20 = arith.constant 0 : i32
    %c8_i32 = arith.constant 8 : i32
    %20 = arith.muli %c0_i32_20, %c8_i32 : i32
    %21 = tpu.assume_multiple %20, 8 : i32
    %22 = arith.index_cast %21 : i32 to index
    %c0_21 = arith.constant 0 : index
    %23 = vector.load %arg9[%22, %c0_21] : memref<64x384xf32, #tpu.memory_space<vmem>>, vector<8x384xf32>
    %24 = arith.truncf %19 : vector<8x128xf32> to vector<8x128xbf16>
    %cst_22 = arith.constant dense<0.000000e+00> : vector<8x384xf32>
    %25 = tpu.matmul %24, %14, %cst_22 {dimension_numbers = #tpu.dot_dimension_numbers<[1], [0], [0], [1], [0, 0, 1, 1], [], []>} : vector<8x128xbf16>, vector<128x384xbf16>, vector<8x384xf32> -> vector<8x384xf32>
    %26 = vector.extract_strided_slice %23 {offsets = [0, 0], sizes = [8, 128], strides = [1, 1]} : vector<8x384xf32> to vector<8x128xf32>
    %27 = vector.extract_strided_slice %25 {offsets = [0, 0], sizes = [8, 128], strides = [1, 1]} : vector<8x384xf32> to vector<8x128xf32>
    %28 = arith.addf %26, %27 : vector<8x128xf32>
    %29 = arith.negf %28 : vector<8x128xf32>
    %30 = math.exp %29 : vector<8x128xf32>
    %cst_23 = arith.constant 1.000000e+00 : f32
    %31 = vector.broadcast %cst_23 : f32 to vector<8x128xf32>
    %32 = arith.addf %31, %30 : vector<8x128xf32>
    %33 = arith.divf %31, %32 : vector<8x128xf32>
    %34 = vector.extract_strided_slice %23 {offsets = [0, 128], sizes = [8, 128], strides = [1, 1]} : vector<8x384xf32> to vector<8x128xf32>
    %35 = vector.extract_strided_slice %25 {offsets = [0, 128], sizes = [8, 128], strides = [1, 1]} : vector<8x384xf32> to vector<8x128xf32>
    %36 = arith.addf %34, %35 : vector<8x128xf32>
    %37 = arith.negf %36 : vector<8x128xf32>
    %38 = math.exp %37 : vector<8x128xf32>
    %cst_24 = arith.constant 1.000000e+00 : f32
    %39 = vector.broadcast %cst_24 : f32 to vector<8x128xf32>
    %40 = arith.addf %39, %38 : vector<8x128xf32>
    %41 = arith.divf %39, %40 : vector<8x128xf32>
    %42 = vector.extract_strided_slice %23 {offsets = [0, 256], sizes = [8, 128], strides = [1, 1]} : vector<8x384xf32> to vector<8x128xf32>
    %43 = vector.extract_strided_slice %25 {offsets = [0, 256], sizes = [8, 128], strides = [1, 1]} : vector<8x384xf32> to vector<8x128xf32>
    %44 = arith.addf %43, %18 : vector<8x128xf32>
    %45 = arith.mulf %33, %44 : vector<8x128xf32>
    %46 = arith.addf %42, %45 : vector<8x128xf32>
    %47 = math.tanh %46 : vector<8x128xf32>
    %48 = arith.subf %19, %47 : vector<8x128xf32>
    %49 = arith.mulf %41, %48 : vector<8x128xf32>
    %50 = arith.addf %47, %49 : vector<8x128xf32>
    %c0_25 = arith.constant 0 : index
    %c0_26 = arith.constant 0 : index
    %51 = arith.index_cast %c0_i32_20 : i32 to index
    %c0_27 = arith.constant 0 : index
    %c0_28 = arith.constant 0 : index
    %52 = vector.load %arg8[%c0_25, %c0_26, %51, %c0_27, %c0_28] : memref<1x1x8x8x128xf32, #tpu.memory_space<vmem>>, vector<1x1x1x8x128xf32>
    %53 = vector.shape_cast %52 : vector<1x1x1x8x128xf32> to vector<8x128xf32>
    %54 = vector.shape_cast %50 : vector<8x128xf32> to vector<1x1x1x8x128xf32>
    tpu.vector_store %arg8[%c0_25, %c0_26, %51, %c0_27, %c0_28], %54 {strides = array<i32>} : memref<1x1x8x8x128xf32, #tpu.memory_space<vmem>>, vector<1x1x1x8x128xf32>,
    %c1_i32 = arith.constant 1 : i32
    %c8_i32_29 = arith.constant 8 : i32
    %55 = arith.muli %c1_i32, %c8_i32_29 : i32
    %56 = tpu.assume_multiple %55, 8 : i32
    %57 = arith.index_cast %56 : i32 to index
    %c0_30 = arith.constant 0 : index
    %58 = vector.load %arg9[%57, %c0_30] : memref<64x384xf32, #tpu.memory_space<vmem>>, vector<8x384xf32>
    %59 = arith.truncf %50 : vector<8x128xf32> to vector<8x128xbf16>
    %cst_31 = arith.constant dense<0.000000e+00> : vector<8x384xf32>
    %60 = tpu.matmul %59, %14, %cst_31 {dimension_numbers = #tpu.dot_dimension_numbers<[1], [0], [0], [1], [0, 0, 1, 1], [], []>} : vector<8x128xbf16>, vector<128x384xbf16>, vector<8x384xf32> -> vector<8x384xf32>
    %61 = vector.extract_strided_slice %58 {offsets = [0, 0], sizes = [8, 128], strides = [1, 1]} : vector<8x384xf32> to vector<8x128xf32>
    %62 = vector.extract_strided_slice %60 {offsets = [0, 0], sizes = [8, 128], strides = [1, 1]} : vector<8x384xf32> to vector<8x128xf32>
    %63 = arith.addf %61, %62 : vector<8x128xf32>
    %64 = arith.negf %63 : vector<8x128xf32>
    %65 = math.exp %64 : vector<8x128xf32>
    %cst_32 = arith.constant 1.000000e+00 : f32
    %66 = vector.broadcast %cst_32 : f32 to vector<8x128xf32>
    %67 = arith.addf %66, %65 : vector<8x128xf32>
    %68 = arith.divf %66, %67 : vector<8x128xf32>
    %69 = vector.extract_strided_slice %58 {offsets = [0, 128], sizes = [8, 128], strides = [1, 1]} : vector<8x384xf32> to vector<8x128xf32>
    %70 = vector.extract_strided_slice %60 {offsets = [0, 128], sizes = [8, 128], strides = [1, 1]} : vector<8x384xf32> to vector<8x128xf32>
    %71 = arith.addf %69, %70 : vector<8x128xf32>
    %72 = arith.negf %71 : vector<8x128xf32>
    %73 = math.exp %72 : vector<8x128xf32>
    %cst_33 = arith.constant 1.000000e+00 : f32
    %74 = vector.broadcast %cst_33 : f32 to vector<8x128xf32>
    %75 = arith.addf %74, %73 : vector<8x128xf32>
    %76 = arith.divf %74, %75 : vector<8x128xf32>
    %77 = vector.extract_strided_slice %58 {offsets = [0, 256], sizes = [8, 128], strides = [1, 1]} : vector<8x384xf32> to vector<8x128xf32>
    %78 = vector.extract_strided_slice %60 {offsets = [0, 256], sizes = [8, 128], strides = [1, 1]} : vector<8x384xf32> to vector<8x128xf32>
    %79 = arith.addf %78, %18 : vector<8x128xf32>
    %80 = arith.mulf %68, %79 : vector<8x128xf32>
    %81 = arith.addf %77, %80 : vector<8x128xf32>
    %82 = math.tanh %81 : vector<8x128xf32>
    %83 = arith.subf %50, %82 : vector<8x128xf32>
    %84 = arith.mulf %76, %83 : vector<8x128xf32>
    %85 = arith.addf %82, %84 : vector<8x128xf32>
    %c0_34 = arith.constant 0 : index
    %c0_35 = arith.constant 0 : index
    %86 = arith.index_cast %c1_i32 : i32 to index
    %c0_36 = arith.constant 0 : index
    %c0_37 = arith.constant 0 : index
    %87 = vector.load %arg8[%c0_34, %c0_35, %86, %c0_36, %c0_37] : memref<1x1x8x8x128xf32, #tpu.memory_space<vmem>>, vector<1x1x1x8x128xf32>
    %88 = vector.shape_cast %87 : vector<1x1x1x8x128xf32> to vector<8x128xf32>
    %89 = vector.shape_cast %85 : vector<8x128xf32> to vector<1x1x1x8x128xf32>
    tpu.vector_store %arg8[%c0_34, %c0_35, %86, %c0_36, %c0_37], %89 {strides = array<i32>} : memref<1x1x8x8x128xf32, #tpu.memory_space<vmem>>, vector<1x1x1x8x128xf32>,
    %c2_i32 = arith.constant 2 : i32
    %c8_i32_38 = arith.constant 8 : i32
    %90 = arith.muli %c2_i32, %c8_i32_38 : i32
    %91 = tpu.assume_multiple %90, 8 : i32
    %92 = arith.index_cast %91 : i32 to index
    %c0_39 = arith.constant 0 : index
    %93 = vector.load %arg9[%92, %c0_39] : memref<64x384xf32, #tpu.memory_space<vmem>>, vector<8x384xf32>
    %94 = arith.truncf %85 : vector<8x128xf32> to vector<8x128xbf16>
    %cst_40 = arith.constant dense<0.000000e+00> : vector<8x384xf32>
    %95 = tpu.matmul %94, %14, %cst_40 {dimension_numbers = #tpu.dot_dimension_numbers<[1], [0], [0], [1], [0, 0, 1, 1], [], []>} : vector<8x128xbf16>, vector<128x384xbf16>, vector<8x384xf32> -> vector<8x384xf32>
    %96 = vector.extract_strided_slice %93 {offsets = [0, 0], sizes = [8, 128], strides = [1, 1]} : vector<8x384xf32> to vector<8x128xf32>
    %97 = vector.extract_strided_slice %95 {offsets = [0, 0], sizes = [8, 128], strides = [1, 1]} : vector<8x384xf32> to vector<8x128xf32>
    %98 = arith.addf %96, %97 : vector<8x128xf32>
    %99 = arith.negf %98 : vector<8x128xf32>
    %100 = math.exp %99 : vector<8x128xf32>
    %cst_41 = arith.constant 1.000000e+00 : f32
    %101 = vector.broadcast %cst_41 : f32 to vector<8x128xf32>
    %102 = arith.addf %101, %100 : vector<8x128xf32>
    %103 = arith.divf %101, %102 : vector<8x128xf32>
    %104 = vector.extract_strided_slice %93 {offsets = [0, 128], sizes = [8, 128], strides = [1, 1]} : vector<8x384xf32> to vector<8x128xf32>
    %105 = vector.extract_strided_slice %95 {offsets = [0, 128], sizes = [8, 128], strides = [1, 1]} : vector<8x384xf32> to vector<8x128xf32>
    %106 = arith.addf %104, %105 : vector<8x128xf32>
    %107 = arith.negf %106 : vector<8x128xf32>
    %108 = math.exp %107 : vector<8x128xf32>
    %cst_42 = arith.constant 1.000000e+00 : f32
    %109 = vector.broadcast %cst_42 : f32 to vector<8x128xf32>
    %110 = arith.addf %109, %108 : vector<8x128xf32>
    %111 = arith.divf %109, %110 : vector<8x128xf32>
    %112 = vector.extract_strided_slice %93 {offsets = [0, 256], sizes = [8, 128], strides = [1, 1]} : vector<8x384xf32> to vector<8x128xf32>
    %113 = vector.extract_strided_slice %95 {offsets = [0, 256], sizes = [8, 128], strides = [1, 1]} : vector<8x384xf32> to vector<8x128xf32>
    %114 = arith.addf %113, %18 : vector<8x128xf32>
    %115 = arith.mulf %103, %114 : vector<8x128xf32>
    %116 = arith.addf %112, %115 : vector<8x128xf32>
    %117 = math.tanh %116 : vector<8x128xf32>
    %118 = arith.subf %85, %117 : vector<8x128xf32>
    %119 = arith.mulf %111, %118 : vector<8x128xf32>
    %120 = arith.addf %117, %119 : vector<8x128xf32>
    %c0_43 = arith.constant 0 : index
    %c0_44 = arith.constant 0 : index
    %121 = arith.index_cast %c2_i32 : i32 to index
    %c0_45 = arith.constant 0 : index
    %c0_46 = arith.constant 0 : index
    %122 = vector.load %arg8[%c0_43, %c0_44, %121, %c0_45, %c0_46] : memref<1x1x8x8x128xf32, #tpu.memory_space<vmem>>, vector<1x1x1x8x128xf32>
    %123 = vector.shape_cast %122 : vector<1x1x1x8x128xf32> to vector<8x128xf32>
    %124 = vector.shape_cast %120 : vector<8x128xf32> to vector<1x1x1x8x128xf32>
    tpu.vector_store %arg8[%c0_43, %c0_44, %121, %c0_45, %c0_46], %124 {strides = array<i32>} : memref<1x1x8x8x128xf32, #tpu.memory_space<vmem>>, vector<1x1x1x8x128xf32>,
    %c3_i32 = arith.constant 3 : i32
    %c8_i32_47 = arith.constant 8 : i32
    %125 = arith.muli %c3_i32, %c8_i32_47 : i32
    %126 = tpu.assume_multiple %125, 8 : i32
    %127 = arith.index_cast %126 : i32 to index
    %c0_48 = arith.constant 0 : index
    %128 = vector.load %arg9[%127, %c0_48] : memref<64x384xf32, #tpu.memory_space<vmem>>, vector<8x384xf32>
    %129 = arith.truncf %120 : vector<8x128xf32> to vector<8x128xbf16>
    %cst_49 = arith.constant dense<0.000000e+00> : vector<8x384xf32>
    %130 = tpu.matmul %129, %14, %cst_49 {dimension_numbers = #tpu.dot_dimension_numbers<[1], [0], [0], [1], [0, 0, 1, 1], [], []>} : vector<8x128xbf16>, vector<128x384xbf16>, vector<8x384xf32> -> vector<8x384xf32>
    %131 = vector.extract_strided_slice %128 {offsets = [0, 0], sizes = [8, 128], strides = [1, 1]} : vector<8x384xf32> to vector<8x128xf32>
    %132 = vector.extract_strided_slice %130 {offsets = [0, 0], sizes = [8, 128], strides = [1, 1]} : vector<8x384xf32> to vector<8x128xf32>
    %133 = arith.addf %131, %132 : vector<8x128xf32>
    %134 = arith.negf %133 : vector<8x128xf32>
    %135 = math.exp %134 : vector<8x128xf32>
    %cst_50 = arith.constant 1.000000e+00 : f32
    %136 = vector.broadcast %cst_50 : f32 to vector<8x128xf32>
    %137 = arith.addf %136, %135 : vector<8x128xf32>
    %138 = arith.divf %136, %137 : vector<8x128xf32>
    %139 = vector.extract_strided_slice %128 {offsets = [0, 128], sizes = [8, 128], strides = [1, 1]} : vector<8x384xf32> to vector<8x128xf32>
    %140 = vector.extract_strided_slice %130 {offsets = [0, 128], sizes = [8, 128], strides = [1, 1]} : vector<8x384xf32> to vector<8x128xf32>
    %141 = arith.addf %139, %140 : vector<8x128xf32>
    %142 = arith.negf %141 : vector<8x128xf32>
    %143 = math.exp %142 : vector<8x128xf32>
    %cst_51 = arith.constant 1.000000e+00 : f32
    %144 = vector.broadcast %cst_51 : f32 to vector<8x128xf32>
    %145 = arith.addf %144, %143 : vector<8x128xf32>
    %146 = arith.divf %144, %145 : vector<8x128xf32>
    %147 = vector.extract_strided_slice %128 {offsets = [0, 256], sizes = [8, 128], strides = [1, 1]} : vector<8x384xf32> to vector<8x128xf32>
    %148 = vector.extract_strided_slice %130 {offsets = [0, 256], sizes = [8, 128], strides = [1, 1]} : vector<8x384xf32> to vector<8x128xf32>
    %149 = arith.addf %148, %18 : vector<8x128xf32>
    %150 = arith.mulf %138, %149 : vector<8x128xf32>
    %151 = arith.addf %147, %150 : vector<8x128xf32>
    %152 = math.tanh %151 : vector<8x128xf32>
    %153 = arith.subf %120, %152 : vector<8x128xf32>
    %154 = arith.mulf %146, %153 : vector<8x128xf32>
    %155 = arith.addf %152, %154 : vector<8x128xf32>
    %c0_52 = arith.constant 0 : index
    %c0_53 = arith.constant 0 : index
    %156 = arith.index_cast %c3_i32 : i32 to index
    %c0_54 = arith.constant 0 : index
    %c0_55 = arith.constant 0 : index
    %157 = vector.load %arg8[%c0_52, %c0_53, %156, %c0_54, %c0_55] : memref<1x1x8x8x128xf32, #tpu.memory_space<vmem>>, vector<1x1x1x8x128xf32>
    %158 = vector.shape_cast %157 : vector<1x1x1x8x128xf32> to vector<8x128xf32>
    %159 = vector.shape_cast %155 : vector<8x128xf32> to vector<1x1x1x8x128xf32>
    tpu.vector_store %arg8[%c0_52, %c0_53, %156, %c0_54, %c0_55], %159 {strides = array<i32>} : memref<1x1x8x8x128xf32, #tpu.memory_space<vmem>>, vector<1x1x1x8x128xf32>,
    %c4_i32 = arith.constant 4 : i32
    %c8_i32_56 = arith.constant 8 : i32
    %160 = arith.muli %c4_i32, %c8_i32_56 : i32
    %161 = tpu.assume_multiple %160, 8 : i32
    %162 = arith.index_cast %161 : i32 to index
    %c0_57 = arith.constant 0 : index
    %163 = vector.load %arg9[%162, %c0_57] : memref<64x384xf32, #tpu.memory_space<vmem>>, vector<8x384xf32>
    %164 = arith.truncf %155 : vector<8x128xf32> to vector<8x128xbf16>
    %cst_58 = arith.constant dense<0.000000e+00> : vector<8x384xf32>
    %165 = tpu.matmul %164, %14, %cst_58 {dimension_numbers = #tpu.dot_dimension_numbers<[1], [0], [0], [1], [0, 0, 1, 1], [], []>} : vector<8x128xbf16>, vector<128x384xbf16>, vector<8x384xf32> -> vector<8x384xf32>
    %166 = vector.extract_strided_slice %163 {offsets = [0, 0], sizes = [8, 128], strides = [1, 1]} : vector<8x384xf32> to vector<8x128xf32>
    %167 = vector.extract_strided_slice %165 {offsets = [0, 0], sizes = [8, 128], strides = [1, 1]} : vector<8x384xf32> to vector<8x128xf32>
    %168 = arith.addf %166, %167 : vector<8x128xf32>
    %169 = arith.negf %168 : vector<8x128xf32>
    %170 = math.exp %169 : vector<8x128xf32>
    %cst_59 = arith.constant 1.000000e+00 : f32
    %171 = vector.broadcast %cst_59 : f32 to vector<8x128xf32>
    %172 = arith.addf %171, %170 : vector<8x128xf32>
    %173 = arith.divf %171, %172 : vector<8x128xf32>
    %174 = vector.extract_strided_slice %163 {offsets = [0, 128], sizes = [8, 128], strides = [1, 1]} : vector<8x384xf32> to vector<8x128xf32>
    %175 = vector.extract_strided_slice %165 {offsets = [0, 128], sizes = [8, 128], strides = [1, 1]} : vector<8x384xf32> to vector<8x128xf32>
    %176 = arith.addf %174, %175 : vector<8x128xf32>
    %177 = arith.negf %176 : vector<8x128xf32>
    %178 = math.exp %177 : vector<8x128xf32>
    %cst_60 = arith.constant 1.000000e+00 : f32
    %179 = vector.broadcast %cst_60 : f32 to vector<8x128xf32>
    %180 = arith.addf %179, %178 : vector<8x128xf32>
    %181 = arith.divf %179, %180 : vector<8x128xf32>
    %182 = vector.extract_strided_slice %163 {offsets = [0, 256], sizes = [8, 128], strides = [1, 1]} : vector<8x384xf32> to vector<8x128xf32>
    %183 = vector.extract_strided_slice %165 {offsets = [0, 256], sizes = [8, 128], strides = [1, 1]} : vector<8x384xf32> to vector<8x128xf32>
    %184 = arith.addf %183, %18 : vector<8x128xf32>
    %185 = arith.mulf %173, %184 : vector<8x128xf32>
    %186 = arith.addf %182, %185 : vector<8x128xf32>
    %187 = math.tanh %186 : vector<8x128xf32>
    %188 = arith.subf %155, %187 : vector<8x128xf32>
    %189 = arith.mulf %181, %188 : vector<8x128xf32>
    %190 = arith.addf %187, %189 : vector<8x128xf32>
    %c0_61 = arith.constant 0 : index
    %c0_62 = arith.constant 0 : index
    %191 = arith.index_cast %c4_i32 : i32 to index
    %c0_63 = arith.constant 0 : index
    %c0_64 = arith.constant 0 : index
    %192 = vector.load %arg8[%c0_61, %c0_62, %191, %c0_63, %c0_64] : memref<1x1x8x8x128xf32, #tpu.memory_space<vmem>>, vector<1x1x1x8x128xf32>
    %193 = vector.shape_cast %192 : vector<1x1x1x8x128xf32> to vector<8x128xf32>
    %194 = vector.shape_cast %190 : vector<8x128xf32> to vector<1x1x1x8x128xf32>
    tpu.vector_store %arg8[%c0_61, %c0_62, %191, %c0_63, %c0_64], %194 {strides = array<i32>} : memref<1x1x8x8x128xf32, #tpu.memory_space<vmem>>, vector<1x1x1x8x128xf32>,
    %c5_i32 = arith.constant 5 : i32
    %c8_i32_65 = arith.constant 8 : i32
    %195 = arith.muli %c5_i32, %c8_i32_65 : i32
    %196 = tpu.assume_multiple %195, 8 : i32
    %197 = arith.index_cast %196 : i32 to index
    %c0_66 = arith.constant 0 : index
    %198 = vector.load %arg9[%197, %c0_66] : memref<64x384xf32, #tpu.memory_space<vmem>>, vector<8x384xf32>
    %199 = arith.truncf %190 : vector<8x128xf32> to vector<8x128xbf16>
    %cst_67 = arith.constant dense<0.000000e+00> : vector<8x384xf32>
    %200 = tpu.matmul %199, %14, %cst_67 {dimension_numbers = #tpu.dot_dimension_numbers<[1], [0], [0], [1], [0, 0, 1, 1], [], []>} : vector<8x128xbf16>, vector<128x384xbf16>, vector<8x384xf32> -> vector<8x384xf32>
    %201 = vector.extract_strided_slice %198 {offsets = [0, 0], sizes = [8, 128], strides = [1, 1]} : vector<8x384xf32> to vector<8x128xf32>
    %202 = vector.extract_strided_slice %200 {offsets = [0, 0], sizes = [8, 128], strides = [1, 1]} : vector<8x384xf32> to vector<8x128xf32>
    %203 = arith.addf %201, %202 : vector<8x128xf32>
    %204 = arith.negf %203 : vector<8x128xf32>
    %205 = math.exp %204 : vector<8x128xf32>
    %cst_68 = arith.constant 1.000000e+00 : f32
    %206 = vector.broadcast %cst_68 : f32 to vector<8x128xf32>
    %207 = arith.addf %206, %205 : vector<8x128xf32>
    %208 = arith.divf %206, %207 : vector<8x128xf32>
    %209 = vector.extract_strided_slice %198 {offsets = [0, 128], sizes = [8, 128], strides = [1, 1]} : vector<8x384xf32> to vector<8x128xf32>
    %210 = vector.extract_strided_slice %200 {offsets = [0, 128], sizes = [8, 128], strides = [1, 1]} : vector<8x384xf32> to vector<8x128xf32>
    %211 = arith.addf %209, %210 : vector<8x128xf32>
    %212 = arith.negf %211 : vector<8x128xf32>
    %213 = math.exp %212 : vector<8x128xf32>
    %cst_69 = arith.constant 1.000000e+00 : f32
    %214 = vector.broadcast %cst_69 : f32 to vector<8x128xf32>
    %215 = arith.addf %214, %213 : vector<8x128xf32>
    %216 = arith.divf %214, %215 : vector<8x128xf32>
    %217 = vector.extract_strided_slice %198 {offsets = [0, 256], sizes = [8, 128], strides = [1, 1]} : vector<8x384xf32> to vector<8x128xf32>
    %218 = vector.extract_strided_slice %200 {offsets = [0, 256], sizes = [8, 128], strides = [1, 1]} : vector<8x384xf32> to vector<8x128xf32>
    %219 = arith.addf %218, %18 : vector<8x128xf32>
    %220 = arith.mulf %208, %219 : vector<8x128xf32>
    %221 = arith.addf %217, %220 : vector<8x128xf32>
    %222 = math.tanh %221 : vector<8x128xf32>
    %223 = arith.subf %190, %222 : vector<8x128xf32>
    %224 = arith.mulf %216, %223 : vector<8x128xf32>
    %225 = arith.addf %222, %224 : vector<8x128xf32>
    %c0_70 = arith.constant 0 : index
    %c0_71 = arith.constant 0 : index
    %226 = arith.index_cast %c5_i32 : i32 to index
    %c0_72 = arith.constant 0 : index
    %c0_73 = arith.constant 0 : index
    %227 = vector.load %arg8[%c0_70, %c0_71, %226, %c0_72, %c0_73] : memref<1x1x8x8x128xf32, #tpu.memory_space<vmem>>, vector<1x1x1x8x128xf32>
    %228 = vector.shape_cast %227 : vector<1x1x1x8x128xf32> to vector<8x128xf32>
    %229 = vector.shape_cast %225 : vector<8x128xf32> to vector<1x1x1x8x128xf32>
    tpu.vector_store %arg8[%c0_70, %c0_71, %226, %c0_72, %c0_73], %229 {strides = array<i32>} : memref<1x1x8x8x128xf32, #tpu.memory_space<vmem>>, vector<1x1x1x8x128xf32>,
    %c6_i32 = arith.constant 6 : i32
    %c8_i32_74 = arith.constant 8 : i32
    %230 = arith.muli %c6_i32, %c8_i32_74 : i32
    %231 = tpu.assume_multiple %230, 8 : i32
    %232 = arith.index_cast %231 : i32 to index
    %c0_75 = arith.constant 0 : index
    %233 = vector.load %arg9[%232, %c0_75] : memref<64x384xf32, #tpu.memory_space<vmem>>, vector<8x384xf32>
    %234 = arith.truncf %225 : vector<8x128xf32> to vector<8x128xbf16>
    %cst_76 = arith.constant dense<0.000000e+00> : vector<8x384xf32>
    %235 = tpu.matmul %234, %14, %cst_76 {dimension_numbers = #tpu.dot_dimension_numbers<[1], [0], [0], [1], [0, 0, 1, 1], [], []>} : vector<8x128xbf16>, vector<128x384xbf16>, vector<8x384xf32> -> vector<8x384xf32>
    %236 = vector.extract_strided_slice %233 {offsets = [0, 0], sizes = [8, 128], strides = [1, 1]} : vector<8x384xf32> to vector<8x128xf32>
    %237 = vector.extract_strided_slice %235 {offsets = [0, 0], sizes = [8, 128], strides = [1, 1]} : vector<8x384xf32> to vector<8x128xf32>
    %238 = arith.addf %236, %237 : vector<8x128xf32>
    %239 = arith.negf %238 : vector<8x128xf32>
    %240 = math.exp %239 : vector<8x128xf32>
    %cst_77 = arith.constant 1.000000e+00 : f32
    %241 = vector.broadcast %cst_77 : f32 to vector<8x128xf32>
    %242 = arith.addf %241, %240 : vector<8x128xf32>
    %243 = arith.divf %241, %242 : vector<8x128xf32>
    %244 = vector.extract_strided_slice %233 {offsets = [0, 128], sizes = [8, 128], strides = [1, 1]} : vector<8x384xf32> to vector<8x128xf32>
    %245 = vector.extract_strided_slice %235 {offsets = [0, 128], sizes = [8, 128], strides = [1, 1]} : vector<8x384xf32> to vector<8x128xf32>
    %246 = arith.addf %244, %245 : vector<8x128xf32>
    %247 = arith.negf %246 : vector<8x128xf32>
    %248 = math.exp %247 : vector<8x128xf32>
    %cst_78 = arith.constant 1.000000e+00 : f32
    %249 = vector.broadcast %cst_78 : f32 to vector<8x128xf32>
    %250 = arith.addf %249, %248 : vector<8x128xf32>
    %251 = arith.divf %249, %250 : vector<8x128xf32>
    %252 = vector.extract_strided_slice %233 {offsets = [0, 256], sizes = [8, 128], strides = [1, 1]} : vector<8x384xf32> to vector<8x128xf32>
    %253 = vector.extract_strided_slice %235 {offsets = [0, 256], sizes = [8, 128], strides = [1, 1]} : vector<8x384xf32> to vector<8x128xf32>
    %254 = arith.addf %253, %18 : vector<8x128xf32>
    %255 = arith.mulf %243, %254 : vector<8x128xf32>
    %256 = arith.addf %252, %255 : vector<8x128xf32>
    %257 = math.tanh %256 : vector<8x128xf32>
    %258 = arith.subf %225, %257 : vector<8x128xf32>
    %259 = arith.mulf %251, %258 : vector<8x128xf32>
    %260 = arith.addf %257, %259 : vector<8x128xf32>
    %c0_79 = arith.constant 0 : index
    %c0_80 = arith.constant 0 : index
    %261 = arith.index_cast %c6_i32 : i32 to index
    %c0_81 = arith.constant 0 : index
    %c0_82 = arith.constant 0 : index
    %262 = vector.load %arg8[%c0_79, %c0_80, %261, %c0_81, %c0_82] : memref<1x1x8x8x128xf32, #tpu.memory_space<vmem>>, vector<1x1x1x8x128xf32>
    %263 = vector.shape_cast %262 : vector<1x1x1x8x128xf32> to vector<8x128xf32>
    %264 = vector.shape_cast %260 : vector<8x128xf32> to vector<1x1x1x8x128xf32>
    tpu.vector_store %arg8[%c0_79, %c0_80, %261, %c0_81, %c0_82], %264 {strides = array<i32>} : memref<1x1x8x8x128xf32, #tpu.memory_space<vmem>>, vector<1x1x1x8x128xf32>,
    %c7_i32 = arith.constant 7 : i32
    %c8_i32_83 = arith.constant 8 : i32
    %265 = arith.muli %c7_i32, %c8_i32_83 : i32
    %266 = tpu.assume_multiple %265, 8 : i32
    %267 = arith.index_cast %266 : i32 to index
    %c0_84 = arith.constant 0 : index
    %268 = vector.load %arg9[%267, %c0_84] : memref<64x384xf32, #tpu.memory_space<vmem>>, vector<8x384xf32>
    %269 = arith.truncf %260 : vector<8x128xf32> to vector<8x128xbf16>
    %cst_85 = arith.constant dense<0.000000e+00> : vector<8x384xf32>
    %270 = tpu.matmul %269, %14, %cst_85 {dimension_numbers = #tpu.dot_dimension_numbers<[1], [0], [0], [1], [0, 0, 1, 1], [], []>} : vector<8x128xbf16>, vector<128x384xbf16>, vector<8x384xf32> -> vector<8x384xf32>
    %271 = vector.extract_strided_slice %268 {offsets = [0, 0], sizes = [8, 128], strides = [1, 1]} : vector<8x384xf32> to vector<8x128xf32>
    %272 = vector.extract_strided_slice %270 {offsets = [0, 0], sizes = [8, 128], strides = [1, 1]} : vector<8x384xf32> to vector<8x128xf32>
    %273 = arith.addf %271, %272 : vector<8x128xf32>
    %274 = arith.negf %273 : vector<8x128xf32>
    %275 = math.exp %274 : vector<8x128xf32>
    %cst_86 = arith.constant 1.000000e+00 : f32
    %276 = vector.broadcast %cst_86 : f32 to vector<8x128xf32>
    %277 = arith.addf %276, %275 : vector<8x128xf32>
    %278 = arith.divf %276, %277 : vector<8x128xf32>
    %279 = vector.extract_strided_slice %268 {offsets = [0, 128], sizes = [8, 128], strides = [1, 1]} : vector<8x384xf32> to vector<8x128xf32>
    %280 = vector.extract_strided_slice %270 {offsets = [0, 128], sizes = [8, 128], strides = [1, 1]} : vector<8x384xf32> to vector<8x128xf32>
    %281 = arith.addf %279, %280 : vector<8x128xf32>
    %282 = arith.negf %281 : vector<8x128xf32>
    %283 = math.exp %282 : vector<8x128xf32>
    %cst_87 = arith.constant 1.000000e+00 : f32
    %284 = vector.broadcast %cst_87 : f32 to vector<8x128xf32>
    %285 = arith.addf %284, %283 : vector<8x128xf32>
    %286 = arith.divf %284, %285 : vector<8x128xf32>
    %287 = vector.extract_strided_slice %268 {offsets = [0, 256], sizes = [8, 128], strides = [1, 1]} : vector<8x384xf32> to vector<8x128xf32>
    %288 = vector.extract_strided_slice %270 {offsets = [0, 256], sizes = [8, 128], strides = [1, 1]} : vector<8x384xf32> to vector<8x128xf32>
    %289 = arith.addf %288, %18 : vector<8x128xf32>
    %290 = arith.mulf %278, %289 : vector<8x128xf32>
    %291 = arith.addf %287, %290 : vector<8x128xf32>
    %292 = math.tanh %291 : vector<8x128xf32>
    %293 = arith.subf %260, %292 : vector<8x128xf32>
    %294 = arith.mulf %286, %293 : vector<8x128xf32>
    %295 = arith.addf %292, %294 : vector<8x128xf32>
    %c0_88 = arith.constant 0 : index
    %c0_89 = arith.constant 0 : index
    %296 = arith.index_cast %c7_i32 : i32 to index
    %c0_90 = arith.constant 0 : index
    %c0_91 = arith.constant 0 : index
    %297 = vector.load %arg8[%c0_88, %c0_89, %296, %c0_90, %c0_91] : memref<1x1x8x8x128xf32, #tpu.memory_space<vmem>>, vector<1x1x1x8x128xf32>
    %298 = vector.shape_cast %297 : vector<1x1x1x8x128xf32> to vector<8x128xf32>
    %299 = vector.shape_cast %295 : vector<8x128xf32> to vector<1x1x1x8x128xf32>
    tpu.vector_store %arg8[%c0_88, %c0_89, %296, %c0_90, %c0_91], %299 {strides = array<i32>} : memref<1x1x8x8x128xf32, #tpu.memory_space<vmem>>, vector<1x1x1x8x128xf32>,
    %c8_i32_92 = arith.constant 8 : i32
    %c0_93 = arith.constant 0 : index
    %c0_94 = arith.constant 0 : index
    %300 = vector.load %arg10[%c0_93, %c0_94] : memref<8x128xf32, #tpu.memory_space<vmem>>, vector<8x128xf32>
    tpu.vector_store %arg10[%c0_93, %c0_94], %295 {strides = array<i32>} : memref<8x128xf32, #tpu.memory_space<vmem>>, vector<8x128xf32>,
    return
  }
  func.func @transform_0(%arg0: i32, %arg1: i32, %arg2: i32) -> (i32, i32, i32, i32) {
    %c0_i32 = arith.constant 0 : i32
    %c0_i32_0 = arith.constant 0 : i32
    return %arg0, %arg1, %arg2, %c0_i32 : i32, i32, i32, i32
  }
  func.func @transform_1(%arg0: i32, %arg1: i32, %arg2: i32) -> (i32, i32, i32) {
    %c0_i32 = arith.constant 0 : i32
    %c0_i32_0 = arith.constant 0 : i32
    %c0_i32_1 = arith.constant 0 : i32
    return %arg0, %c0_i32, %c0_i32_0 : i32, i32, i32
  }
  func.func @transform_2(%arg0: i32, %arg1: i32, %arg2: i32) -> (i32, i32, i32) {
    %c0_i32 = arith.constant 0 : i32
    %c0_i32_0 = arith.constant 0 : i32
    %c0_i32_1 = arith.constant 0 : i32
    return %arg0, %c0_i32, %c0_i32_0 : i32, i32, i32
  }
  func.func @transform_3(%arg0: i32, %arg1: i32, %arg2: i32) -> (i32, i32, i32) {
    %c0_i32 = arith.constant 0 : i32
    %c0_i32_0 = arith.constant 0 : i32
    %c0_i32_1 = arith.constant 0 : i32
    return %arg0, %c0_i32, %c0_i32_0 : i32, i32, i32
  }
  func.func @transform_4(%arg0: i32, %arg1: i32, %arg2: i32) -> (i32, i32, i32) {
    %c0_i32 = arith.constant 0 : i32
    %c0_i32_0 = arith.constant 0 : i32
    %c0_i32_1 = arith.constant 0 : i32
    return %arg0, %c0_i32, %c0_i32_0 : i32, i32, i32
  }
  func.func @transform_5(%arg0: i32, %arg1: i32, %arg2: i32) -> (i32, i32, i32, i32, i32) {
    %c0_i32 = arith.constant 0 : i32
    %c0_i32_0 = arith.constant 0 : i32
    %c0_i32_1 = arith.constant 0 : i32
    return %arg0, %arg1, %arg2, %c0_i32, %c0_i32_0 : i32, i32, i32, i32, i32
  }
}

module attributes {stable_mosaic.version = 11 : i64} {
  func.func @_gru_chunk_kernel(%arg0: i32, %arg1: i32, %arg2: i32, %arg3: memref<1x1x32x32xbf16, #tpu.memory_space<vmem>>, %arg4: memref<1x32x384xbf16, #tpu.memory_space<vmem>>, %arg5: memref<1x1x384xf32, #tpu.memory_space<vmem>>, %arg6: memref<1x128x384xbf16, #tpu.memory_space<vmem>>, %arg7: memref<1x1x128xf32, #tpu.memory_space<vmem>>, %arg8: memref<1x1x4x8x128xf32, #tpu.memory_space<vmem>>, %arg9: memref<32x384xf32, #tpu.memory_space<vmem>>, %arg10: memref<8x128xf32, #tpu.memory_space<vmem>>) attributes {dimension_semantics = [#tpu.dimension_semantics<parallel>, #tpu.dimension_semantics<parallel>, #tpu.dimension_semantics<arbitrary>], iteration_bounds = array<i64: 2, 1, 1>, scalar_prefetch = 0 : i64, scratch_operands = 2 : i64, tpu.core_type = #tpu.core_type<tc>, window_params = [{transform_indices = @transform_0, window_bounds = array<i64: 1, 1, 32, 32>}, {transform_indices = @transform_1, window_bounds = array<i64: 1, 32, 384>}, {transform_indices = @transform_2, window_bounds = array<i64: 1, 1, 384>}, {transform_indices = @transform_3, window_bounds = array<i64: 1, 128, 384>}, {transform_indices = @transform_4, window_bounds = array<i64: 1, 1, 128>}, {transform_indices = @transform_5, window_bounds = array<i64: 1, 1, 4, 8, 128>}]} {
    %c0_i32 = arith.constant 0 : i32
    %0 = arith.cmpi eq, %arg2, %c0_i32 : i32
    %1 = arith.extui %0 : i1 to i32
    %c0_i32_0 = arith.constant 0 : i32
    %2 = arith.cmpi ne, %1, %c0_i32_0 : i32
    scf.if %2 {
      %cst_58 = arith.constant 0.000000e+00 : f32
      %161 = vector.broadcast %cst_58 : f32 to vector<8x128xf32>
      %c0_59 = arith.constant 0 : index
      %c0_60 = arith.constant 0 : index
      %162 = vector.load %arg10[%c0_59, %c0_60] : memref<8x128xf32, #tpu.memory_space<vmem>>, vector<8x128xf32>
      tpu.vector_store %arg10[%c0_59, %c0_60], %161 {strides = array<i32>} : memref<8x128xf32, #tpu.memory_space<vmem>>, vector<8x128xf32>,
    } else {
    }
    %c0 = arith.constant 0 : index
    %c0_1 = arith.constant 0 : index
    %c0_2 = arith.constant 0 : index
    %c0_3 = arith.constant 0 : index
    %3 = vector.load %arg3[%c0, %c0_1, %c0_2, %c0_3] : memref<1x1x32x32xbf16, #tpu.memory_space<vmem>>, vector<1x1x32x32xbf16>
    %4 = vector.shape_cast %3 : vector<1x1x32x32xbf16> to vector<32x32xbf16>
    %c0_4 = arith.constant 0 : index
    %c0_5 = arith.constant 0 : index
    %c0_6 = arith.constant 0 : index
    %5 = vector.load %arg4[%c0_4, %c0_5, %c0_6] : memref<1x32x384xbf16, #tpu.memory_space<vmem>>, vector<1x32x384xbf16>
    %6 = vector.shape_cast %5 : vector<1x32x384xbf16> to vector<32x384xbf16>
    %cst = arith.constant dense<0.000000e+00> : vector<32x384xf32>
    %7 = tpu.matmul %4, %6, %cst {dimension_numbers = #tpu.dot_dimension_numbers<[1], [0], [0], [1], [0, 0, 1, 1], [], []>} : vector<32x32xbf16>, vector<32x384xbf16>, vector<32x384xf32> -> vector<32x384xf32>
    %c0_7 = arith.constant 0 : index
    %c0_8 = arith.constant 0 : index
    %c0_9 = arith.constant 0 : index
    %8 = vector.load %arg5[%c0_7, %c0_8, %c0_9] : memref<1x1x384xf32, #tpu.memory_space<vmem>>, vector<1x1x384xf32>
    %9 = vector.shape_cast %8 : vector<1x1x384xf32> to vector<1x384xf32>
    %10 = vector.broadcast %9 : vector<1x384xf32> to vector<32x384xf32>
    %11 = arith.addf %7, %10 : vector<32x384xf32>
    %c0_10 = arith.constant 0 : index
    %c0_11 = arith.constant 0 : index
    %12 = vector.load %arg9[%c0_10, %c0_11] : memref<32x384xf32, #tpu.memory_space<vmem>>, vector<32x384xf32>
    tpu.vector_store %arg9[%c0_10, %c0_11], %11 {strides = array<i32>} : memref<32x384xf32, #tpu.memory_space<vmem>>, vector<32x384xf32>,
    %c0_12 = arith.constant 0 : index
    %c0_13 = arith.constant 0 : index
    %c0_14 = arith.constant 0 : index
    %13 = vector.load %arg6[%c0_12, %c0_13, %c0_14] : memref<1x128x384xbf16, #tpu.memory_space<vmem>>, vector<1x128x384xbf16>
    %14 = vector.shape_cast %13 : vector<1x128x384xbf16> to vector<128x384xbf16>
    %c0_15 = arith.constant 0 : index
    %c0_16 = arith.constant 0 : index
    %c0_17 = arith.constant 0 : index
    %15 = vector.load %arg7[%c0_15, %c0_16, %c0_17] : memref<1x1x128xf32, #tpu.memory_space<vmem>>, vector<1x1x128xf32>
    %16 = vector.shape_cast %15 : vector<1x1x128xf32> to vector<1x128xf32>
    %17 = vector.shape_cast %16 : vector<1x128xf32> to vector<1x128xf32>
    %18 = vector.broadcast %17 : vector<1x128xf32> to vector<8x128xf32>
    %c0_18 = arith.constant 0 : index
    %c0_19 = arith.constant 0 : index
    %19 = vector.load %arg10[%c0_18, %c0_19] : memref<8x128xf32, #tpu.memory_space<vmem>>, vector<8x128xf32>
    %c0_i32_20 = arith.constant 0 : i32
    %c8_i32 = arith.constant 8 : i32
    %20 = arith.muli %c0_i32_20, %c8_i32 : i32
    %21 = tpu.assume_multiple %20, 8 : i32
    %22 = arith.index_cast %21 : i32 to index
    %c0_21 = arith.constant 0 : index
    %23 = vector.load %arg9[%22, %c0_21] : memref<32x384xf32, #tpu.memory_space<vmem>>, vector<8x384xf32>
    %24 = arith.truncf %19 : vector<8x128xf32> to vector<8x128xbf16>
    %cst_22 = arith.constant dense<0.000000e+00> : vector<8x384xf32>
    %25 = tpu.matmul %24, %14, %cst_22 {dimension_numbers = #tpu.dot_dimension_numbers<[1], [0], [0], [1], [0, 0, 1, 1], [], []>} : vector<8x128xbf16>, vector<128x384xbf16>, vector<8x384xf32> -> vector<8x384xf32>
    %26 = vector.extract_strided_slice %23 {offsets = [0, 0], sizes = [8, 128], strides = [1, 1]} : vector<8x384xf32> to vector<8x128xf32>
    %27 = vector.extract_strided_slice %25 {offsets = [0, 0], sizes = [8, 128], strides = [1, 1]} : vector<8x384xf32> to vector<8x128xf32>
    %28 = arith.addf %26, %27 : vector<8x128xf32>
    %29 = arith.negf %28 : vector<8x128xf32>
    %30 = math.exp %29 : vector<8x128xf32>
    %cst_23 = arith.constant 1.000000e+00 : f32
    %31 = vector.broadcast %cst_23 : f32 to vector<8x128xf32>
    %32 = arith.addf %31, %30 : vector<8x128xf32>
    %33 = arith.divf %31, %32 : vector<8x128xf32>
    %34 = vector.extract_strided_slice %23 {offsets = [0, 128], sizes = [8, 128], strides = [1, 1]} : vector<8x384xf32> to vector<8x128xf32>
    %35 = vector.extract_strided_slice %25 {offsets = [0, 128], sizes = [8, 128], strides = [1, 1]} : vector<8x384xf32> to vector<8x128xf32>
    %36 = arith.addf %34, %35 : vector<8x128xf32>
    %37 = arith.negf %36 : vector<8x128xf32>
    %38 = math.exp %37 : vector<8x128xf32>
    %cst_24 = arith.constant 1.000000e+00 : f32
    %39 = vector.broadcast %cst_24 : f32 to vector<8x128xf32>
    %40 = arith.addf %39, %38 : vector<8x128xf32>
    %41 = arith.divf %39, %40 : vector<8x128xf32>
    %42 = vector.extract_strided_slice %23 {offsets = [0, 256], sizes = [8, 128], strides = [1, 1]} : vector<8x384xf32> to vector<8x128xf32>
    %43 = vector.extract_strided_slice %25 {offsets = [0, 256], sizes = [8, 128], strides = [1, 1]} : vector<8x384xf32> to vector<8x128xf32>
    %44 = arith.addf %43, %18 : vector<8x128xf32>
    %45 = arith.mulf %33, %44 : vector<8x128xf32>
    %46 = arith.addf %42, %45 : vector<8x128xf32>
    %47 = math.tanh %46 : vector<8x128xf32>
    %48 = arith.subf %19, %47 : vector<8x128xf32>
    %49 = arith.mulf %41, %48 : vector<8x128xf32>
    %50 = arith.addf %47, %49 : vector<8x128xf32>
    %c0_25 = arith.constant 0 : index
    %c0_26 = arith.constant 0 : index
    %51 = arith.index_cast %c0_i32_20 : i32 to index
    %c0_27 = arith.constant 0 : index
    %c0_28 = arith.constant 0 : index
    %52 = vector.load %arg8[%c0_25, %c0_26, %51, %c0_27, %c0_28] : memref<1x1x4x8x128xf32, #tpu.memory_space<vmem>>, vector<1x1x1x8x128xf32>
    %53 = vector.shape_cast %52 : vector<1x1x1x8x128xf32> to vector<8x128xf32>
    %54 = vector.shape_cast %50 : vector<8x128xf32> to vector<1x1x1x8x128xf32>
    tpu.vector_store %arg8[%c0_25, %c0_26, %51, %c0_27, %c0_28], %54 {strides = array<i32>} : memref<1x1x4x8x128xf32, #tpu.memory_space<vmem>>, vector<1x1x1x8x128xf32>,
    %c1_i32 = arith.constant 1 : i32
    %c8_i32_29 = arith.constant 8 : i32
    %55 = arith.muli %c1_i32, %c8_i32_29 : i32
    %56 = tpu.assume_multiple %55, 8 : i32
    %57 = arith.index_cast %56 : i32 to index
    %c0_30 = arith.constant 0 : index
    %58 = vector.load %arg9[%57, %c0_30] : memref<32x384xf32, #tpu.memory_space<vmem>>, vector<8x384xf32>
    %59 = arith.truncf %50 : vector<8x128xf32> to vector<8x128xbf16>
    %cst_31 = arith.constant dense<0.000000e+00> : vector<8x384xf32>
    %60 = tpu.matmul %59, %14, %cst_31 {dimension_numbers = #tpu.dot_dimension_numbers<[1], [0], [0], [1], [0, 0, 1, 1], [], []>} : vector<8x128xbf16>, vector<128x384xbf16>, vector<8x384xf32> -> vector<8x384xf32>
    %61 = vector.extract_strided_slice %58 {offsets = [0, 0], sizes = [8, 128], strides = [1, 1]} : vector<8x384xf32> to vector<8x128xf32>
    %62 = vector.extract_strided_slice %60 {offsets = [0, 0], sizes = [8, 128], strides = [1, 1]} : vector<8x384xf32> to vector<8x128xf32>
    %63 = arith.addf %61, %62 : vector<8x128xf32>
    %64 = arith.negf %63 : vector<8x128xf32>
    %65 = math.exp %64 : vector<8x128xf32>
    %cst_32 = arith.constant 1.000000e+00 : f32
    %66 = vector.broadcast %cst_32 : f32 to vector<8x128xf32>
    %67 = arith.addf %66, %65 : vector<8x128xf32>
    %68 = arith.divf %66, %67 : vector<8x128xf32>
    %69 = vector.extract_strided_slice %58 {offsets = [0, 128], sizes = [8, 128], strides = [1, 1]} : vector<8x384xf32> to vector<8x128xf32>
    %70 = vector.extract_strided_slice %60 {offsets = [0, 128], sizes = [8, 128], strides = [1, 1]} : vector<8x384xf32> to vector<8x128xf32>
    %71 = arith.addf %69, %70 : vector<8x128xf32>
    %72 = arith.negf %71 : vector<8x128xf32>
    %73 = math.exp %72 : vector<8x128xf32>
    %cst_33 = arith.constant 1.000000e+00 : f32
    %74 = vector.broadcast %cst_33 : f32 to vector<8x128xf32>
    %75 = arith.addf %74, %73 : vector<8x128xf32>
    %76 = arith.divf %74, %75 : vector<8x128xf32>
    %77 = vector.extract_strided_slice %58 {offsets = [0, 256], sizes = [8, 128], strides = [1, 1]} : vector<8x384xf32> to vector<8x128xf32>
    %78 = vector.extract_strided_slice %60 {offsets = [0, 256], sizes = [8, 128], strides = [1, 1]} : vector<8x384xf32> to vector<8x128xf32>
    %79 = arith.addf %78, %18 : vector<8x128xf32>
    %80 = arith.mulf %68, %79 : vector<8x128xf32>
    %81 = arith.addf %77, %80 : vector<8x128xf32>
    %82 = math.tanh %81 : vector<8x128xf32>
    %83 = arith.subf %50, %82 : vector<8x128xf32>
    %84 = arith.mulf %76, %83 : vector<8x128xf32>
    %85 = arith.addf %82, %84 : vector<8x128xf32>
    %c0_34 = arith.constant 0 : index
    %c0_35 = arith.constant 0 : index
    %86 = arith.index_cast %c1_i32 : i32 to index
    %c0_36 = arith.constant 0 : index
    %c0_37 = arith.constant 0 : index
    %87 = vector.load %arg8[%c0_34, %c0_35, %86, %c0_36, %c0_37] : memref<1x1x4x8x128xf32, #tpu.memory_space<vmem>>, vector<1x1x1x8x128xf32>
    %88 = vector.shape_cast %87 : vector<1x1x1x8x128xf32> to vector<8x128xf32>
    %89 = vector.shape_cast %85 : vector<8x128xf32> to vector<1x1x1x8x128xf32>
    tpu.vector_store %arg8[%c0_34, %c0_35, %86, %c0_36, %c0_37], %89 {strides = array<i32>} : memref<1x1x4x8x128xf32, #tpu.memory_space<vmem>>, vector<1x1x1x8x128xf32>,
    %c2_i32 = arith.constant 2 : i32
    %c8_i32_38 = arith.constant 8 : i32
    %90 = arith.muli %c2_i32, %c8_i32_38 : i32
    %91 = tpu.assume_multiple %90, 8 : i32
    %92 = arith.index_cast %91 : i32 to index
    %c0_39 = arith.constant 0 : index
    %93 = vector.load %arg9[%92, %c0_39] : memref<32x384xf32, #tpu.memory_space<vmem>>, vector<8x384xf32>
    %94 = arith.truncf %85 : vector<8x128xf32> to vector<8x128xbf16>
    %cst_40 = arith.constant dense<0.000000e+00> : vector<8x384xf32>
    %95 = tpu.matmul %94, %14, %cst_40 {dimension_numbers = #tpu.dot_dimension_numbers<[1], [0], [0], [1], [0, 0, 1, 1], [], []>} : vector<8x128xbf16>, vector<128x384xbf16>, vector<8x384xf32> -> vector<8x384xf32>
    %96 = vector.extract_strided_slice %93 {offsets = [0, 0], sizes = [8, 128], strides = [1, 1]} : vector<8x384xf32> to vector<8x128xf32>
    %97 = vector.extract_strided_slice %95 {offsets = [0, 0], sizes = [8, 128], strides = [1, 1]} : vector<8x384xf32> to vector<8x128xf32>
    %98 = arith.addf %96, %97 : vector<8x128xf32>
    %99 = arith.negf %98 : vector<8x128xf32>
    %100 = math.exp %99 : vector<8x128xf32>
    %cst_41 = arith.constant 1.000000e+00 : f32
    %101 = vector.broadcast %cst_41 : f32 to vector<8x128xf32>
    %102 = arith.addf %101, %100 : vector<8x128xf32>
    %103 = arith.divf %101, %102 : vector<8x128xf32>
    %104 = vector.extract_strided_slice %93 {offsets = [0, 128], sizes = [8, 128], strides = [1, 1]} : vector<8x384xf32> to vector<8x128xf32>
    %105 = vector.extract_strided_slice %95 {offsets = [0, 128], sizes = [8, 128], strides = [1, 1]} : vector<8x384xf32> to vector<8x128xf32>
    %106 = arith.addf %104, %105 : vector<8x128xf32>
    %107 = arith.negf %106 : vector<8x128xf32>
    %108 = math.exp %107 : vector<8x128xf32>
    %cst_42 = arith.constant 1.000000e+00 : f32
    %109 = vector.broadcast %cst_42 : f32 to vector<8x128xf32>
    %110 = arith.addf %109, %108 : vector<8x128xf32>
    %111 = arith.divf %109, %110 : vector<8x128xf32>
    %112 = vector.extract_strided_slice %93 {offsets = [0, 256], sizes = [8, 128], strides = [1, 1]} : vector<8x384xf32> to vector<8x128xf32>
    %113 = vector.extract_strided_slice %95 {offsets = [0, 256], sizes = [8, 128], strides = [1, 1]} : vector<8x384xf32> to vector<8x128xf32>
    %114 = arith.addf %113, %18 : vector<8x128xf32>
    %115 = arith.mulf %103, %114 : vector<8x128xf32>
    %116 = arith.addf %112, %115 : vector<8x128xf32>
    %117 = math.tanh %116 : vector<8x128xf32>
    %118 = arith.subf %85, %117 : vector<8x128xf32>
    %119 = arith.mulf %111, %118 : vector<8x128xf32>
    %120 = arith.addf %117, %119 : vector<8x128xf32>
    %c0_43 = arith.constant 0 : index
    %c0_44 = arith.constant 0 : index
    %121 = arith.index_cast %c2_i32 : i32 to index
    %c0_45 = arith.constant 0 : index
    %c0_46 = arith.constant 0 : index
    %122 = vector.load %arg8[%c0_43, %c0_44, %121, %c0_45, %c0_46] : memref<1x1x4x8x128xf32, #tpu.memory_space<vmem>>, vector<1x1x1x8x128xf32>
    %123 = vector.shape_cast %122 : vector<1x1x1x8x128xf32> to vector<8x128xf32>
    %124 = vector.shape_cast %120 : vector<8x128xf32> to vector<1x1x1x8x128xf32>
    tpu.vector_store %arg8[%c0_43, %c0_44, %121, %c0_45, %c0_46], %124 {strides = array<i32>} : memref<1x1x4x8x128xf32, #tpu.memory_space<vmem>>, vector<1x1x1x8x128xf32>,
    %c3_i32 = arith.constant 3 : i32
    %c8_i32_47 = arith.constant 8 : i32
    %125 = arith.muli %c3_i32, %c8_i32_47 : i32
    %126 = tpu.assume_multiple %125, 8 : i32
    %127 = arith.index_cast %126 : i32 to index
    %c0_48 = arith.constant 0 : index
    %128 = vector.load %arg9[%127, %c0_48] : memref<32x384xf32, #tpu.memory_space<vmem>>, vector<8x384xf32>
    %129 = arith.truncf %120 : vector<8x128xf32> to vector<8x128xbf16>
    %cst_49 = arith.constant dense<0.000000e+00> : vector<8x384xf32>
    %130 = tpu.matmul %129, %14, %cst_49 {dimension_numbers = #tpu.dot_dimension_numbers<[1], [0], [0], [1], [0, 0, 1, 1], [], []>} : vector<8x128xbf16>, vector<128x384xbf16>, vector<8x384xf32> -> vector<8x384xf32>
    %131 = vector.extract_strided_slice %128 {offsets = [0, 0], sizes = [8, 128], strides = [1, 1]} : vector<8x384xf32> to vector<8x128xf32>
    %132 = vector.extract_strided_slice %130 {offsets = [0, 0], sizes = [8, 128], strides = [1, 1]} : vector<8x384xf32> to vector<8x128xf32>
    %133 = arith.addf %131, %132 : vector<8x128xf32>
    %134 = arith.negf %133 : vector<8x128xf32>
    %135 = math.exp %134 : vector<8x128xf32>
    %cst_50 = arith.constant 1.000000e+00 : f32
    %136 = vector.broadcast %cst_50 : f32 to vector<8x128xf32>
    %137 = arith.addf %136, %135 : vector<8x128xf32>
    %138 = arith.divf %136, %137 : vector<8x128xf32>
    %139 = vector.extract_strided_slice %128 {offsets = [0, 128], sizes = [8, 128], strides = [1, 1]} : vector<8x384xf32> to vector<8x128xf32>
    %140 = vector.extract_strided_slice %130 {offsets = [0, 128], sizes = [8, 128], strides = [1, 1]} : vector<8x384xf32> to vector<8x128xf32>
    %141 = arith.addf %139, %140 : vector<8x128xf32>
    %142 = arith.negf %141 : vector<8x128xf32>
    %143 = math.exp %142 : vector<8x128xf32>
    %cst_51 = arith.constant 1.000000e+00 : f32
    %144 = vector.broadcast %cst_51 : f32 to vector<8x128xf32>
    %145 = arith.addf %144, %143 : vector<8x128xf32>
    %146 = arith.divf %144, %145 : vector<8x128xf32>
    %147 = vector.extract_strided_slice %128 {offsets = [0, 256], sizes = [8, 128], strides = [1, 1]} : vector<8x384xf32> to vector<8x128xf32>
    %148 = vector.extract_strided_slice %130 {offsets = [0, 256], sizes = [8, 128], strides = [1, 1]} : vector<8x384xf32> to vector<8x128xf32>
    %149 = arith.addf %148, %18 : vector<8x128xf32>
    %150 = arith.mulf %138, %149 : vector<8x128xf32>
    %151 = arith.addf %147, %150 : vector<8x128xf32>
    %152 = math.tanh %151 : vector<8x128xf32>
    %153 = arith.subf %120, %152 : vector<8x128xf32>
    %154 = arith.mulf %146, %153 : vector<8x128xf32>
    %155 = arith.addf %152, %154 : vector<8x128xf32>
    %c0_52 = arith.constant 0 : index
    %c0_53 = arith.constant 0 : index
    %156 = arith.index_cast %c3_i32 : i32 to index
    %c0_54 = arith.constant 0 : index
    %c0_55 = arith.constant 0 : index
    %157 = vector.load %arg8[%c0_52, %c0_53, %156, %c0_54, %c0_55] : memref<1x1x4x8x128xf32, #tpu.memory_space<vmem>>, vector<1x1x1x8x128xf32>
    %158 = vector.shape_cast %157 : vector<1x1x1x8x128xf32> to vector<8x128xf32>
    %159 = vector.shape_cast %155 : vector<8x128xf32> to vector<1x1x1x8x128xf32>
    tpu.vector_store %arg8[%c0_52, %c0_53, %156, %c0_54, %c0_55], %159 {strides = array<i32>} : memref<1x1x4x8x128xf32, #tpu.memory_space<vmem>>, vector<1x1x1x8x128xf32>,
    %c4_i32 = arith.constant 4 : i32
    %c0_56 = arith.constant 0 : index
    %c0_57 = arith.constant 0 : index
    %160 = vector.load %arg10[%c0_56, %c0_57] : memref<8x128xf32, #tpu.memory_space<vmem>>, vector<8x128xf32>
    tpu.vector_store %arg10[%c0_56, %c0_57], %155 {strides = array<i32>} : memref<8x128xf32, #tpu.memory_space<vmem>>, vector<8x128xf32>,
    return
  }
  func.func @transform_0(%arg0: i32, %arg1: i32, %arg2: i32) -> (i32, i32, i32, i32) {
    %c0_i32 = arith.constant 0 : i32
    %c0_i32_0 = arith.constant 0 : i32
    return %arg0, %arg1, %arg2, %c0_i32 : i32, i32, i32, i32
  }
  func.func @transform_1(%arg0: i32, %arg1: i32, %arg2: i32) -> (i32, i32, i32) {
    %c0_i32 = arith.constant 0 : i32
    %c0_i32_0 = arith.constant 0 : i32
    %c0_i32_1 = arith.constant 0 : i32
    return %arg0, %c0_i32, %c0_i32_0 : i32, i32, i32
  }
  func.func @transform_2(%arg0: i32, %arg1: i32, %arg2: i32) -> (i32, i32, i32) {
    %c0_i32 = arith.constant 0 : i32
    %c0_i32_0 = arith.constant 0 : i32
    %c0_i32_1 = arith.constant 0 : i32
    return %arg0, %c0_i32, %c0_i32_0 : i32, i32, i32
  }
  func.func @transform_3(%arg0: i32, %arg1: i32, %arg2: i32) -> (i32, i32, i32) {
    %c0_i32 = arith.constant 0 : i32
    %c0_i32_0 = arith.constant 0 : i32
    %c0_i32_1 = arith.constant 0 : i32
    return %arg0, %c0_i32, %c0_i32_0 : i32, i32, i32
  }
  func.func @transform_4(%arg0: i32, %arg1: i32, %arg2: i32) -> (i32, i32, i32) {
    %c0_i32 = arith.constant 0 : i32
    %c0_i32_0 = arith.constant 0 : i32
    %c0_i32_1 = arith.constant 0 : i32
    return %arg0, %c0_i32, %c0_i32_0 : i32, i32, i32
  }
  func.func @transform_5(%arg0: i32, %arg1: i32, %arg2: i32) -> (i32, i32, i32, i32, i32) {
    %c0_i32 = arith.constant 0 : i32
    %c0_i32_0 = arith.constant 0 : i32
    %c0_i32_1 = arith.constant 0 : i32
    return %arg0, %arg1, %arg2, %c0_i32, %c0_i32_0 : i32, i32, i32, i32, i32
  }
}

</mosaic_0001>

<bundles_post_ra>
// kernel: dilated_rnn_forward.3
= control target key start
LH: loop header
LB: loop body
LE: loop exit
PB: predicated region body
PF: predicated region fallthrough
CT: control target
= control target key end

     0   :  { %s1698_s18 = smov 0   ;;  %s1700_s19 = smov 0   ;;  %s2022_s0 = inlined_call_operand.vmem [shape: bf16[2,1,32,32], index: 0, kind: input, shape index: {}]   ;;  %s2023_s1 = inlined_call_operand.vmem [shape: bf16[2,32,384], index: 1, kind: input, shape index: {}]   ;;  %s2024_s2 = inlined_call_operand.vmem [shape: f32[2,1,384], index: 2, kind: input, shape index: {}]   ;;  %s2025_s3 = inlined_call_operand.vmem [shape: bf16[2,128,384], index: 3, kind: input, shape index: {}]   ;;  %s2026_s4 = inlined_call_operand.vmem [shape: f32[2,1,128], index: 4, kind: input, shape index: {}]   ;;  %s2027_s5 = inlined_call_operand.vmem [shape: f32[2,1,4,8,128], index: 5, kind: output, shape index: {}]  }
   0x1   :  { %s1702_s20 = smov 0  }
   0x2 LB: > { %s34_s21 = sadd.s32 1, %s1658_s19  ;;  %p1340_p0 = scmp.ge.s32.totalorder %s1662_s20, 1  ;;  %s1662_s20 = sphi %s1702_s20, %s15_s20   ;;  %s1658_s19 = sphi %s1700_s19, %s2029_s19   ;;  %s1654_s18 = sphi %s1698_s18, %s2028_s18  }
   0x3   : > { %p36_p1 = scmp.ge.s32.totalorder %s34_s21, 2  ;;  %p260_p2 = scmp.lt.s32.totalorder %s1662_s20, 3 }
   0x5   : > { %s2031_s21 = smov (%p36_p1, %s34_s21), 0  ;;  %p261_p3 = pnand %p1340_p0, %p260_p2 }
   0x6   : > { %p322_p4 = scmp.lt.s32.totalorder (!%p261_p3), %s1654_s18, 1  ;;  %v1664_v0 = vmov (!%p261_p3), 0   ;;  %vm443_vm0 = vcmask (!%p261_p3), 261120   ;;  %v1665_v17 = vmov (!%p261_p3), 0.0   ;;  %vm1666_vm1 = vmmov (!%p261_p3), 0  }
   0x7   : > { %264 = sbr.rel (%p261_p3) target bundleno = 1110 (0x456), region = 40  ;;  %482 = vmatprep.mubr.bf16.mxu0 (!%p261_p3), %v1664_v0  ;;  %v1667_v33 = vmov (!%p261_p3), 0.0|0.0   ;;  %v386_v35 = vlaneseq (!%p261_p3) }
   0x9   : > { %v387_v36 = vshrl.u32 (!%p261_p3), %v386_v35, 7 }
   0xb   : > { %v388_v37 = vsub.s32 (!%p261_p3), 0, %v387_v36  ;;  %v392_v39 = vsub.s32 (!%p261_p3), 1, %v387_v36  ;;  %v396_v43 = vsub.s32 (!%p261_p3), 2, %v387_v36 }
   0xe   : > { %s2033_s18 = smov (!%p322_p4, %s1654_s18), 1 }
   0xf   : > { %s1527_s22 = smul.u32 48, %s2033_s18  ;;  %s1397_s23 = sshll.u32 %s2033_s18, 4 }
  0x10   : > { %s1529_s24 = smul.u32 192, %s2033_s18  ;;  %s333_s27 = scalar_lea.vmem %s2022_s0, %s1397_s23 }
  0x11   : > { %s339_s30 = scalar_lea.vmem %s2023_s1, %s1527_s22  ;;  %v1564_v1 = vld [vmem:[%s333_s27] sm:$0xff]   ;;  %v1584_v13 = vld [vmem:[%s333_s27 + $0x8] sm:$0xff]   ;;  %s1528_s9 = smul.u32 3, %s2033_s18 }
  0x12   : > { %v1558_v2 = vld [vmem:[%s339_s30 + $0x4] ss:$12 sps:$4 sm:$0xff]   ;;  %s1731_s8 = scalar_lea.vmem %s2025_s3, %s1529_s24  ;;  %v1560_v3 = vld [vmem:[%s339_s30] ss:$12 sps:$4 sm:$0xff]   ;;  %1443 = vmatprep.mubr.msk.bf16.mxu1 %vm443_vm0, %v1564_v1  ;;  %v1561_v4 = vld [vmem:[%s339_s30 + $0x1c] ss:$12 sps:$4 sm:$0xff]   ;;  %s351_s15 = scalar_lea.vmem %s2026_s4, %s2033_s18 }
  0x13   : > { %450 = vmatprep.subr.bf16.mxu0 %v1558_v2  ;;  %v1563_v5 = vld [vmem:[%s339_s30 + $0x18] ss:$12 sps:$4 sm:$0xff]   ;;  %v1738_v7 = vld [vmem:[%s1731_s8] ss:$12 sps:$4 sm:$0xff]   ;;  %v1741_v8 = vld [vmem:[%s1731_s8 + $0x1c] ss:$12 sps:$4 sm:$0xff]   ;;  %s343_s12 = scalar_lea.vmem %s2024_s2, %s1528_s9 }
  0x14   : > { %451 = vmatpush1.bf16.msra.mxu0 %v1560_v3  ;;  %v1735_v6 = vld [vmem:[%s1731_s8 + $0x4] ss:$12 sps:$4 sm:$0xff]   ;;  %v1577_v9 = vld [vmem:[%s339_s30 + $0x8] ss:$12 sps:$4 sm:$0xff]   ;;  %v1581_v11 = vld [vmem:[%s339_s30 + $0x20] ss:$12 sps:$4 sm:$0xff]  }
  0x15   : > { %452 = vmatprep.subr.bf16.mxu0 %v1561_v4  ;;  %v1746_v10 = vld [vmem:[%s1731_s8 + $0x18] ss:$12 sps:$4 sm:$0xff]   ;;  %1439 = vmatprep.subr.bf16.mxu1 %v1577_v9  ;;  %v1751_v12 = vld [vmem:[%s1731_s8 + $0x34] ss:$12 sps:$4 sm:$0xff]   ;;  %v1756_v14 = vld [vmem:[%s1731_s8 + $0x30] ss:$12 sps:$4 sm:$0xff]  }
  0x16   : > { %1440 = vmatpush3.bf16.msra.mxu1 %v1577_v9  ;;  %v1759_v15 = vld [vmem:[%s1731_s8 + $0x8] ss:$12 sps:$4 sm:$0xff]   ;;  %v1763_v16 = vld [vmem:[%s1731_s8 + $0x4c] ss:$12 sps:$4 sm:$0xff]   ;;  %v1778_v20 = vld [vmem:[%s1731_s8 + $0x64] ss:$12 sps:$4 sm:$0xff]  }
  0x17   : > { %1441 = vmatprep.subr.bf16.mxu1 %v1581_v11  ;;  %v1767_v18 = vld [vmem:[%s1731_s8 + $0x48] ss:$12 sps:$4 sm:$0xff]   ;;  %v1774_v19 = vld [vmem:[%s1731_s8 + $0x20] ss:$12 sps:$4 sm:$0xff]   ;;  %v1790_v22 = vld [vmem:[%s1731_s8 + $0x38] ss:$12 sps:$4 sm:$0xff]  }
  0x18   : > { %453 = vmatpush1.bf16.msra.mxu0 %v1563_v5  ;;  %v1785_v21 = vld [vmem:[%s1731_s8 + $0x60] ss:$12 sps:$4 sm:$0xff]   ;;  %v1794_v23 = vld [vmem:[%s1731_s8 + $0x7c] ss:$12 sps:$4 sm:$0xff]   ;;  %v1799_v24 = vld [vmem:[%s1731_s8 + $0x78] ss:$12 sps:$4 sm:$0xff]  }
  0x19   : > { %739 = vmatprep.subr.bf16.mxu0 %v1735_v6  ;;  %v1803_v25 = vld [vmem:[%s1731_s8 + $0x50] ss:$12 sps:$4 sm:$0xff]   ;;  %v1807_v26 = vld [vmem:[%s1731_s8 + $0x94] ss:$12 sps:$4 sm:$0xff]   ;;  %v1820_v29 = vld [vmem:[%s1731_s8 + $0xac] ss:$12 sps:$4 sm:$0xff]  }
  0x1a   : > { %1442 = vmatpush3.bf16.msra.mxu1 %v1581_v11  ;;  %v1812_v27 = vld [vmem:[%s1731_s8 + $0x90] ss:$12 sps:$4 sm:$0xff]   ;;  %v1816_v28 = vld [vmem:[%s1731_s8 + $0x68] ss:$12 sps:$4 sm:$0xff]   ;;  %v1829_v31 = vld [vmem:[%s1731_s8 + $0x80] ss:$12 sps:$4 sm:$0xff]  }
  0x1b   : > { %1355 = vmatmul.mubr.msk.bf16.vlgmr.msra.gmra.mrb[0].mxu0 %vm443_vm0, %v1564_v1  ;;  %1447 = vmatprep.subr.bf16.mxu1 %v1665_v17  ;;  %v1825_v30 = vld [vmem:[%s1731_s8 + $0xa8] ss:$12 sps:$4 sm:$0xff]   ;;  %v1836_v32 = vld [vmem:[%s1731_s8 + $0x98] ss:$12 sps:$4 sm:$0xff]   ;;  %v1842_v34 = vld [vmem:[%s1731_s8 + $0xb0] ss:$12 sps:$4 sm:$0xff]  }
  0x1c   : > { %740 = vmatpush1.bf16.msra.mxu0 %v1738_v7  ;;  %492 = vmatprep.mubr.bf16.mxu0 %v1664_v0  ;;  %v384_v38 = vld [vmem:[%s343_s12] sm:$0x7]  ;;  %s1398_s16 = sshll.u32 %s2033_s18, 5 }
  0x1d   : > { %741 = vmatprep.subr.bf16.mxu0 %v1741_v8  ;;  %1444 = vmatmul.mubr.msk.bf16.vlgmr.msra.gmra.mrb[0].mxu1 %vm443_vm0, %v1584_v13  ;;  %v389_v40 = vrot.slane %v384_v38, %v388_v37  ;;  %v393_v44 = vrot.slane %v384_v38, %v392_v39  ;;  %v397_v49 = vrot.slane %v384_v38, %v396_v43  ;;  %s1915_s23 = scalar_lea.vmem %s2027_s5, %s1398_s16 }
  0x1e   : > { %1448 = vmatpush3.bf16.msra.mxu1 %v1759_v15  ;;  %1463 = vmatprep.mubr.msk.bf16.mxu1 %vm1666_vm1, %v1665_v17 }
  0x1f   : > { %1449 = vmatprep.subr.bf16.mxu1 %v1665_v17 }
  0x20   : > { %742 = vmatpush1.bf16.msra.mxu0 %v1746_v10 }
  0x21   : > { %743 = vmatprep.subr.bf16.mxu0 %v1751_v12 }
  0x22   : > { %1450 = vmatpush3.bf16.msra.mxu1 %v1774_v19 }
  0x23   : > { %1356 = vmatmul.mubr.msk.bf16.gmra.mrb[4].mxu0 %vm443_vm0, %v1584_v13  ;;  %1451 = vmatprep.subr.bf16.mxu1 %v1665_v17 }
  0x24   : > { %744 = vmatpush1.bf16.msra.mxu0 %v1756_v14  ;;  %771 = vmatprep.mubr.bf16.mxu0 %v1664_v0 }
  0x25   : > { %745 = vmatprep.subr.bf16.mxu0 %v1763_v16 }
  0x26   : > { %1452 = vmatpush3.bf16.msra.mxu1 %v1790_v22 }
  0x27   : > { %1453 = vmatprep.subr.bf16.mxu1 %v1665_v17 }
  0x28   : > { %746 = vmatpush1.bf16.msra.mxu0 %v1767_v18 }
  0x29   : > { %747 = vmatprep.subr.bf16.mxu0 %v1778_v20 }
  0x2a   : > { %1454 = vmatpush3.bf16.msra.mxu1 %v1803_v25 }
  0x2b   : > { %1455 = vmatprep.subr.bf16.mxu1 %v1665_v17 }
  0x2c   : > { %748 = vmatpush1.bf16.msra.mxu0 %v1785_v21 }
  0x2d   : > { %749 = vmatprep.subr.bf16.mxu0 %v1794_v23 }
  0x2e   : > { %1456 = vmatpush3.bf16.msra.mxu1 %v1816_v28 }
  0x2f   : > { %1457 = vmatprep.subr.bf16.mxu1 %v1665_v17 }
  0x30   : > { %750 = vmatpush1.bf16.msra.mxu0 %v1799_v24 }
  0x31   : > { %751 = vmatprep.subr.bf16.mxu0 %v1807_v26 }
  0x32   : > { %1458 = vmatpush3.bf16.msra.mxu1 %v1829_v31 }
  0x33   : > { %1459 = vmatprep.subr.bf16.mxu1 %v1665_v17 }
  0x34   : > { %752 = vmatpush1.bf16.msra.mxu0 %v1812_v27 }
  0x35   : > { %753 = vmatprep.subr.bf16.mxu0 %v1820_v29 }
  0x36   : > { %1460 = vmatpush3.bf16.msra.mxu1 %v1836_v32 }
  0x37   : > { %1461 = vmatprep.subr.bf16.mxu1 %v1665_v17 }
  0x38   : > { %754 = vmatpush1.bf16.msra.mxu0 %v1825_v30 }
  0x39   : > { %849 = vmatprep.subr.bf16.mxu0 %v1735_v6 }
  0x3a   : > { %1462 = vmatpush3.bf16.msra.mxu1 %v1842_v34 }
  0x3b   : > { %772 = vmatmul.mubr.bf16.vlgmr.msra.gmra.mrb[8].mxu0 %v1667_v33  ;;  %1467 = vmatprep.subr.bf16.mxu1 %v1665_v17 }
  0x3c   : > { %850 = vmatpush1.bf16.msra.mxu0 %v1738_v7  ;;  %881 = vmatprep.mubr.bf16.mxu0 %v1664_v0 }
  0x3d   : > { %851 = vmatprep.subr.bf16.mxu0 %v1741_v8  ;;  %1464 = vmatmul.mubr.bf16.vlgmr.msra.gmra.mrb[4].mxu1 %v1667_v33 }
  0x3e   : > { %1468 = vmatpush3.bf16.msra.mxu1 %v1759_v15  ;;  %1483 = vmatprep.mubr.msk.bf16.mxu1 %vm1666_vm1, %v1665_v17 }
  0x3f   : > { %1469 = vmatprep.subr.bf16.mxu1 %v1665_v17 }
  0x40   : > { %852 = vmatpush1.bf16.msra.mxu0 %v1746_v10 }
  0x41   : > { %853 = vmatprep.subr.bf16.mxu0 %v1751_v12 }
  0x42   : > { %1470 = vmatpush3.bf16.msra.mxu1 %v1774_v19 }
  0x43   : > { %1471 = vmatprep.subr.bf16.mxu1 %v1665_v17 }
  0x44   : > { %854 = vmatpush1.bf16.msra.mxu0 %v1756_v14 }
  0x45   : > { %855 = vmatprep.subr.bf16.mxu0 %v1763_v16 }
  0x46   : > { %1472 = vmatpush3.bf16.msra.mxu1 %v1790_v22 }
  0x47   : > { %1473 = vmatprep.subr.bf16.mxu1 %v1665_v17 }
  0x48   : > { %856 = vmatpush1.bf16.msra.mxu0 %v1767_v18 }
  0x49   : > { %857 = vmatprep.subr.bf16.mxu0 %v1778_v20 }
  0x4a   : > { %1474 = vmatpush3.bf16.msra.mxu1 %v1803_v25 }
  0x4b   : > { %1475 = vmatprep.subr.bf16.mxu1 %v1665_v17 }
  0x4c   : > { %858 = vmatpush1.bf16.msra.mxu0 %v1785_v21 }
  0x4d   : > { %859 = vmatprep.subr.bf16.mxu0 %v1794_v23 }
  0x4e   : > { %1476 = vmatpush3.bf16.msra.mxu1 %v1816_v28 }
  0x4f   : > { %1477 = vmatprep.subr.bf16.mxu1 %v1665_v17 }
  0x50   : > { %860 = vmatpush1.bf16.msra.mxu0 %v1799_v24 }
  0x51   : > { %861 = vmatprep.subr.bf16.mxu0 %v1807_v26 }
  0x52   : > { %1478 = vmatpush3.bf16.msra.mxu1 %v1829_v31 }
  0x53   : > { %1479 = vmatprep.subr.bf16.mxu1 %v1665_v17 }
  0x54   : > { %862 = vmatpush1.bf16.msra.mxu0 %v1812_v27 }
  0x55   : > { %863 = vmatprep.subr.bf16.mxu0 %v1820_v29 }
  0x56   : > { %1480 = vmatpush3.bf16.msra.mxu1 %v1836_v32 }
  0x57   : > { %1481 = vmatprep.subr.bf16.mxu1 %v1665_v17 }
  0x58   : > { %864 = vmatpush1.bf16.msra.mxu0 %v1825_v30 }
  0x59   : > { %960 = vmatprep.subr.bf16.mxu0 %v1735_v6 }
  0x5a   : > { %1482 = vmatpush3.bf16.msra.mxu1 %v1842_v34 }
  0x5b   : > { %1487 = vmatprep.subr.bf16.mxu1 %v1665_v17 }
  0xee   : > { %v484_v41 = vpop.f32.mrb[0].mxu0 }
  0xef   : > { %v486_v42 = vpop.f32.mrb[1].mxu0  ;;  %v485_v2 = vadd.f32 %v484_v41, %v389_v40 }
  0xf0   : > { %v488_v45 = vpop.f32.mrb[2].mxu0  ;;  %v1445_v51 = vpop.f32.mrb[0].mxu1  ;;  %v487_v3 = vadd.f32 %v486_v42, %v393_v44 }
  0xf1   : > { %v1886_v46 = vadd.f32 %v488_v45, %v389_v40  ;;  %v490_v47 = vpop.f32.mrb[3].mxu0  ;;  %v1892_v54 = vadd.f32 %v1445_v51, %v397_v49  ;;  %v537_v55 = vpop.f32.mrb[1].mxu1 }
  0xf2   : > { %v1888_v48 = vadd.f32 %v490_v47, %v393_v44  ;;  %v1446_v58 = vpop.f32.mrb[2].mxu1 }
  0xf3   : > { %v1898_v61 = vadd.f32 %v1446_v58, %v397_v49  ;;  %v540_v62 = vpop.f32.mrb[3].mxu1 }
  0xf4   : > { %v1902_v1 = vadd.f32 %v540_v62, %v397_v49 }
  0xf6   : > { %v494_v50 = vpop.f32.mrb[4].mxu0 }
  0xf7   : > { %v1890_v52 = vadd.f32 %v494_v50, %v389_v40  ;;  %v496_v53 = vpop.f32.mrb[5].mxu0  ;;  %v538_v50 = vadd.f32 %v537_v55, %v397_v49 }
  0xf8   : > { %v1894_v56 = vadd.f32 %v496_v53, %v393_v44  ;;  %v498_v57 = vpop.f32.mrb[6].mxu0 }
  0xf9   : > { %v1896_v59 = vadd.f32 %v498_v57, %v389_v40  ;;  %v500_v60 = vpop.f32.mrb[7].mxu0  ;;  %v1908_v40 = vld [vmem:[%s351_s15] ss:$0 sm:$0xff] }
  0xfa   : > { %v1900_v63 = vadd.f32 %v500_v60, %v393_v44 }
 0x10e   : > { %v773_v4 = vpop.f32.mrb[8].mxu0 }
 0x10f   : > { %v820_v5 = vadd.f32 %v773_v4, %v485_v2  ;;  %v775_v9 = vpop.f32.mrb[9].mxu0 }
 0x110   : > { %v827_v11 = vadd.f32 %v775_v9, %v487_v3  ;;  %v777_v13 = vpop.f32.mrb[10].mxu0  ;;  %v814_v36 = vpop.f32.mrb[4].mxu1 }
 0x111   : > { %v1384_v33 = vmul.f32 -1.442695, %v820_v5  ;;  %v778_v35 = vpop.f32.mrb[11].mxu0  ;;  %v1465_v37 = vpop.f32.mrb[5].mxu1  ;;  %v834_v41 = vadd.f32 %v1908_v40, %v814_v36 }
 0x112   : > { %v817_v38 = vpop.f32.mrb[6].mxu1  ;;  %v1385_v43 = vmul.f32 -1.442695, %v827_v11 }
 0x113   : > { %1600 = vpow2.f32 %v1384_v33  ;;  %v1466_v39 = vpop.f32.mrb[7].mxu1 }
 0x114   : > { %1602 = vpow2.f32 %v1385_v43 }
 0x11d   : > { %v1601_v45 = vpop.eup %1600 }
 0x11e   : > { %v824_v47 = vadd.f32 1.0, %v1601_v45  ;;  %v1603_v42 = vpop.eup %1602 }
 0x11f   : > { %v831_v53 = vadd.f32 1.0, %v1603_v42 }
 0x120   : > { %1604 = vrcp.f32 %v824_v47 }
 0x12a   : > { %v1605_v44 = vpop.eup %1604 }
 0x12b   : > { %v835_v51 = vmul.f32 %v1605_v44, %v834_v41 }
 0x12d   : > { %v836_v57 = vadd.f32 %v835_v51, %v538_v50 }
 0x12f   : > { %1606 = vtanh.f32 %v836_v57 }
 0x130   : > { %1608 = vrcp.f32 %v831_v53 }
 0x139   : > { %v1607_v58 = vpop.eup %1606 }
 0x13a   : > { %v838_v60 = vsub.f32 0.0, %v1607_v58  ;;  %v1609_v62 = vpop.eup %1608 }
 0x13c   : > { %v839_v2 = vmul.f32 %v1609_v62, %v838_v60 }
 0x13e   : > { %v1917_v3 = vadd.f32 %v1607_v58, %v839_v2 }
 0x140   : > { %841 = vst [vmem:[%s1915_s23] sm:$0xff] %v1917_v3  ;;  %v848_v49 = vpack.c.bf16 %v1917_v3, %v1917_v3 }
 0x142   : > { %882 = vmatmul.mubr.bf16.vlgmr.msra.gmra.mrb[12].mxu0 %v848_v49  ;;  %1484 = vmatmul.mubr.bf16.vlgmr.msra.gmra.mrb[8].mxu1 %v848_v49 }
 0x143   : > { %961 = vmatpush1.bf16.msra.mxu0 %v1738_v7  ;;  %1488 = vmatpush3.bf16.msra.mxu1 %v1759_v15 }
 0x144   : > { %962 = vmatprep.subr.bf16.mxu0 %v1741_v8  ;;  %1489 = vmatprep.subr.bf16.mxu1 %v1665_v17 }
 0x145   : > { %992 = vmatprep.mubr.bf16.mxu0 %v1664_v0  ;;  %1503 = vmatprep.mubr.msk.bf16.mxu1 %vm1666_vm1, %v1665_v17 }
 0x147   : > { %963 = vmatpush1.bf16.msra.mxu0 %v1746_v10  ;;  %1490 = vmatpush3.bf16.msra.mxu1 %v1774_v19 }
 0x148   : > { %964 = vmatprep.subr.bf16.mxu0 %v1751_v12  ;;  %1491 = vmatprep.subr.bf16.mxu1 %v1665_v17 }
 0x14b   : > { %965 = vmatpush1.bf16.msra.mxu0 %v1756_v14  ;;  %1492 = vmatpush3.bf16.msra.mxu1 %v1790_v22 }
 0x14c   : > { %966 = vmatprep.subr.bf16.mxu0 %v1763_v16  ;;  %1493 = vmatprep.subr.bf16.mxu1 %v1665_v17 }
 0x14f   : > { %967 = vmatpush1.bf16.msra.mxu0 %v1767_v18  ;;  %1494 = vmatpush3.bf16.msra.mxu1 %v1803_v25 }
 0x150   : > { %968 = vmatprep.subr.bf16.mxu0 %v1778_v20  ;;  %1495 = vmatprep.subr.bf16.mxu1 %v1665_v17 }
 0x153   : > { %969 = vmatpush1.bf16.msra.mxu0 %v1785_v21  ;;  %1496 = vmatpush3.bf16.msra.mxu1 %v1816_v28 }
 0x154   : > { %970 = vmatprep.subr.bf16.mxu0 %v1794_v23  ;;  %1497 = vmatprep.subr.bf16.mxu1 %v1665_v17 }
 0x157   : > { %971 = vmatpush1.bf16.msra.mxu0 %v1799_v24  ;;  %1498 = vmatpush3.bf16.msra.mxu1 %v1829_v31 }
 0x158   : > { %972 = vmatprep.subr.bf16.mxu0 %v1807_v26  ;;  %1499 = vmatprep.subr.bf16.mxu1 %v1665_v17 }
 0x15b   : > { %973 = vmatpush1.bf16.msra.mxu0 %v1812_v27  ;;  %1500 = vmatpush3.bf16.msra.mxu1 %v1836_v32 }
 0x15c   : > { %974 = vmatprep.subr.bf16.mxu0 %v1820_v29  ;;  %1501 = vmatprep.subr.bf16.mxu1 %v1665_v17 }
 0x15f   : > { %975 = vmatpush1.bf16.msra.mxu0 %v1825_v30  ;;  %1502 = vmatpush3.bf16.msra.mxu1 %v1842_v34 }
 0x160   : > { %1071 = vmatprep.subr.bf16.mxu0 %v1735_v6  ;;  %1507 = vmatprep.subr.bf16.mxu1 %v1665_v17 }
 0x215   : > { %v883_v55 = vpop.f32.mrb[12].mxu0  ;;  %v924_v4 = vpop.f32.mrb[8].mxu1 }
 0x216   : > { %v930_v5 = vadd.f32 %v883_v55, %v1886_v46  ;;  %v885_v9 = vpop.f32.mrb[13].mxu0  ;;  %v1485_v11 = vpop.f32.mrb[9].mxu1  ;;  %v944_v47 = vadd.f32 %v1908_v40, %v924_v4 }
 0x217   : > { %v937_v13 = vadd.f32 %v885_v9, %v1888_v48  ;;  %v887_v33 = vpop.f32.mrb[14].mxu0  ;;  %v927_v35 = vpop.f32.mrb[10].mxu1 }
 0x218   : > { %v1386_v36 = vmul.f32 -1.442695, %v930_v5  ;;  %v888_v37 = vpop.f32.mrb[15].mxu0  ;;  %v1486_v38 = vpop.f32.mrb[11].mxu1 }
 0x219   : > { %v1387_v39 = vmul.f32 -1.442695, %v937_v13 }
 0x21a   : > { %1610 = vpow2.f32 %v1386_v36 }
 0x21b   : > { %1612 = vpow2.f32 %v1387_v39 }
 0x224   : > { %v1611_v43 = vpop.eup %1610 }
 0x225   : > { %v934_v45 = vadd.f32 1.0, %v1611_v43  ;;  %v1613_v6 = vpop.eup %1612 }
 0x226   : > { %v941_v48 = vadd.f32 1.0, %v1613_v6 }
 0x227   : > { %1614 = vrcp.f32 %v934_v45 }
 0x231   : > { %v1615_v46 = vpop.eup %1614 }
 0x232   : > { %v945_v41 = vmul.f32 %v1615_v46, %v944_v47 }
 0x234   : > { %v946_v42 = vadd.f32 %v945_v41, %v1902_v1 }
 0x236   : > { %1616 = vtanh.f32 %v946_v42 }
 0x237   : > { %1618 = vrcp.f32 %v941_v48 }
 0x240   : > { %v1617_v44 = vpop.eup %1616 }
 0x241   : > { %v948_v50 = vsub.f32 %v1917_v3, %v1617_v44  ;;  %v1619_v51 = vpop.eup %1618 }
 0x243   : > { %v949_v53 = vmul.f32 %v1619_v51, %v948_v50 }
 0x245   : > { %v1963_v57 = vadd.f32 %v1617_v44, %v949_v53 }
 0x247   : > { %1388 = vst [vmem:[%s1915_s23 + $0x8] sm:$0xff] %v1963_v57  ;;  %v959_v58 = vpack.c.bf16 %v1963_v57, %v1963_v57 }
 0x249   : > { %993 = vmatmul.mubr.bf16.vlgmr.msra.gmra.mrb[16].mxu0 %v959_v58  ;;  %1504 = vmatmul.mubr.bf16.vlgmr.msra.gmra.mrb[12].mxu1 %v959_v58 }
 0x24a   : > { %1072 = vmatpush1.bf16.msra.mxu0 %v1738_v7  ;;  %1508 = vmatpush3.bf16.msra.mxu1 %v1759_v15 }
 0x24b   : > { %1073 = vmatprep.subr.bf16.mxu0 %v1741_v8  ;;  %1509 = vmatprep.subr.bf16.mxu1 %v1665_v17 }
 0x24c   : > { %1103 = vmatprep.mubr.bf16.mxu0 %v1664_v0  ;;  %1523 = vmatprep.mubr.msk.bf16.mxu1 %vm1666_vm1, %v1665_v17 }
 0x24e   : > { %1074 = vmatpush1.bf16.msra.mxu0 %v1746_v10  ;;  %1510 = vmatpush3.bf16.msra.mxu1 %v1774_v19 }
 0x24f   : > { %1075 = vmatprep.subr.bf16.mxu0 %v1751_v12  ;;  %1511 = vmatprep.subr.bf16.mxu1 %v1665_v17 }
 0x252   : > { %1076 = vmatpush1.bf16.msra.mxu0 %v1756_v14  ;;  %1512 = vmatpush3.bf16.msra.mxu1 %v1790_v22 }
 0x253   : > { %1077 = vmatprep.subr.bf16.mxu0 %v1763_v16  ;;  %1513 = vmatprep.subr.bf16.mxu1 %v1665_v17 }
 0x256   : > { %1078 = vmatpush1.bf16.msra.mxu0 %v1767_v18  ;;  %1514 = vmatpush3.bf16.msra.mxu1 %v1803_v25 }
 0x257   : > { %1079 = vmatprep.subr.bf16.mxu0 %v1778_v20  ;;  %1515 = vmatprep.subr.bf16.mxu1 %v1665_v17 }
 0x25a   : > { %1080 = vmatpush1.bf16.msra.mxu0 %v1785_v21  ;;  %1516 = vmatpush3.bf16.msra.mxu1 %v1816_v28 }
 0x25b   : > { %1081 = vmatprep.subr.bf16.mxu0 %v1794_v23  ;;  %1517 = vmatprep.subr.bf16.mxu1 %v1665_v17 }
 0x25e   : > { %1082 = vmatpush1.bf16.msra.mxu0 %v1799_v24  ;;  %1518 = vmatpush3.bf16.msra.mxu1 %v1829_v31 }
 0x25f   : > { %1083 = vmatprep.subr.bf16.mxu0 %v1807_v26  ;;  %1519 = vmatprep.subr.bf16.mxu1 %v1665_v17 }
 0x262   : > { %1084 = vmatpush1.bf16.msra.mxu0 %v1812_v27  ;;  %1520 = vmatpush3.bf16.msra.mxu1 %v1836_v32 }
 0x263   : > { %1085 = vmatprep.subr.bf16.mxu0 %v1820_v29  ;;  %1521 = vmatprep.subr.bf16.mxu1 %v1665_v17 }
 0x266   : > { %1086 = vmatpush1.bf16.msra.mxu0 %v1825_v30  ;;  %1522 = vmatpush3.bf16.msra.mxu1 %v1842_v34 }
 0x31c   : > { %v994_v0 = vpop.f32.mrb[16].mxu0  ;;  %v1035_v7 = vpop.f32.mrb[12].mxu1 }
 0x31d   : > { %v1041_v8 = vadd.f32 %v994_v0, %v1890_v52  ;;  %v996_v10 = vpop.f32.mrb[17].mxu0  ;;  %v1505_v12 = vpop.f32.mrb[13].mxu1  ;;  %v1055_v24 = vadd.f32 %v1908_v40, %v1035_v7 }
 0x31e   : > { %v1048_v14 = vadd.f32 %v996_v10, %v1894_v56  ;;  %v998_v15 = vpop.f32.mrb[18].mxu0  ;;  %v1038_v16 = vpop.f32.mrb[14].mxu1 }
 0x31f   : > { %v1389_v18 = vmul.f32 -1.442695, %v1041_v8  ;;  %v999_v19 = vpop.f32.mrb[19].mxu0  ;;  %v1506_v20 = vpop.f32.mrb[15].mxu1 }
 0x320   : > { %v1390_v21 = vmul.f32 -1.442695, %v1048_v14 }
 0x321   : > { %1620 = vpow2.f32 %v1389_v18 }
 0x322   : > { %1622 = vpow2.f32 %v1390_v21 }
 0x32b   : > { %v1621_v17 = vpop.eup %1620 }
 0x32c   : > { %v1045_v22 = vadd.f32 1.0, %v1621_v17  ;;  %v1623_v23 = vpop.eup %1622 }
 0x32d   : > { %v1052_v28 = vadd.f32 1.0, %v1623_v23 }
 0x32e   : > { %1624 = vrcp.f32 %v1045_v22 }
 0x338   : > { %v1625_v25 = vpop.eup %1624 }
 0x339   : > { %v1056_v26 = vmul.f32 %v1625_v25, %v1055_v24 }
 0x33b   : > { %v1057_v27 = vadd.f32 %v1056_v26, %v1892_v54 }
 0x33d   : > { %1626 = vtanh.f32 %v1057_v27 }
 0x33e   : > { %1628 = vrcp.f32 %v1052_v28 }
 0x347   : > { %v1627_v29 = vpop.eup %1626 }
 0x348   : > { %v1059_v30 = vsub.f32 %v1963_v57, %v1627_v29  ;;  %v1629_v31 = vpop.eup %1628 }
 0x34a   : > { %v1060_v32 = vmul.f32 %v1629_v31, %v1059_v30 }
 0x34c   : > { %v1061_v34 = vadd.f32 %v1627_v29, %v1060_v32 }
 0x34e   : > { %1391 = vst [vmem:[%s1915_s23 + $0x10] sm:$0xff] %v1061_v34  ;;  %v1070_v52 = vpack.c.bf16 %v1061_v34, %v1061_v34 }
 0x350   : > { %1104 = vmatmul.mubr.bf16.vlgmr.msra.gmra.mrb[20].mxu0 %v1070_v52  ;;  %1524 = vmatmul.mubr.bf16.vlgmr.msra.gmra.mrb[16].mxu1 %v1070_v52 }
 0x423   : > { %v1105_v56 = vpop.f32.mrb[20].mxu0  ;;  %v1146_v1 = vpop.f32.mrb[16].mxu1 }
 0x424   : > { %v1152_v60 = vadd.f32 %v1105_v56, %v1896_v59  ;;  %v1107_v62 = vpop.f32.mrb[21].mxu0  ;;  %v1525_v2 = vpop.f32.mrb[17].mxu1  ;;  %v1166_v35 = vadd.f32 %v1908_v40, %v1146_v1 }
 0x425   : > { %v1159_v54 = vadd.f32 %v1107_v62, %v1900_v63  ;;  %v1109_v3 = vpop.f32.mrb[22].mxu0  ;;  %v1149_v49 = vpop.f32.mrb[18].mxu1 }
 0x426   : > { %v1392_v55 = vmul.f32 -1.442695, %v1152_v60  ;;  %v1110_v4 = vpop.f32.mrb[23].mxu0  ;;  %v1526_v5 = vpop.f32.mrb[19].mxu1 }
 0x427   : > { %v1393_v9 = vmul.f32 -1.442695, %v1159_v54 }
 0x428   : > { %1630 = vpow2.f32 %v1392_v55 }
 0x429   : > { %1632 = vpow2.f32 %v1393_v9 }
 0x432   : > { %v1631_v11 = vpop.eup %1630 }
 0x433   : > { %v1156_v13 = vadd.f32 1.0, %v1631_v11  ;;  %v1633_v33 = vpop.eup %1632 }
 0x434   : > { %v1163_v63 = vadd.f32 1.0, %v1633_v33 }
 0x435   : > { %1634 = vrcp.f32 %v1156_v13 }
 0x43f   : > { %v1635_v59 = vpop.eup %1634 }
 0x440   : > { %v1167_v36 = vmul.f32 %v1635_v59, %v1166_v35 }
 0x442   : > { %v1168_v37 = vadd.f32 %v1167_v36, %v1898_v61 }
 0x444   : > { %1636 = vtanh.f32 %v1168_v37 }
 0x445   : > { %1638 = vrcp.f32 %v1163_v63 }
 0x44e   : > { %v1637_v38 = vpop.eup %1636 }
 0x44f   : > { %v1170_v39 = vsub.f32 %v1061_v34, %v1637_v38  ;;  %v1639_v43 = vpop.eup %1638 }
 0x451   : > { %v1171_v45 = vmul.f32 %v1639_v43, %v1170_v39 }
 0x453   : > { %v1172_v6 = vadd.f32 %v1637_v38, %v1171_v45 }
 0x455   : > { %1394 = vst [vmem:[%s1915_s23 + $0x18] sm:$0xff] %v1172_v6 }
 0x456 PF: > { %s15_s20 = sadd.s32 1, %s1662_s20   ;;  %s2028_s18 = smov %s1658_s19 }
 0x457   : > { %p12_p5 = scmp.ge.s32.totalorder %s15_s20, 4   ;;  %s2029_s19 = smov %s2031_s21 }
 0x459   :  { %14 = sbr.rel (!%p12_p5) target bundleno = 2 (0x2), region = 93 }

// kernel: dilated_rnn_forward.2
= control target key start
LH: loop header
LB: loop body
LE: loop exit
PB: predicated region body
PF: predicated region fallthrough
CT: control target
= control target key end

     0   :  { %s2388_s18 = smov 0   ;;  %s2390_s19 = smov 0   ;;  %s2952_s0 = inlined_call_operand.vmem [shape: bf16[2,1,64,8], index: 0, kind: input, shape index: {}]   ;;  %s2953_s1 = inlined_call_operand.vmem [shape: bf16[2,8,384], index: 1, kind: input, shape index: {}]   ;;  %s2954_s2 = inlined_call_operand.vmem [shape: f32[2,1,384], index: 2, kind: input, shape index: {}]   ;;  %s2955_s3 = inlined_call_operand.vmem [shape: bf16[2,128,384], index: 3, kind: input, shape index: {}]   ;;  %s2956_s4 = inlined_call_operand.vmem [shape: f32[2,1,128], index: 4, kind: input, shape index: {}]   ;;  %s2957_s5 = inlined_call_operand.vmem [shape: f32[2,1,8,8,128], index: 5, kind: output, shape index: {}]  }
   0x1   :  { %s2392_s20 = smov 0  }
   0x2 LB: > { %s34_s21 = sadd.s32 1, %s2348_s19  ;;  %p1836_p0 = scmp.ge.s32.totalorder %s2352_s20, 1  ;;  %s2352_s20 = sphi %s2392_s20, %s15_s20   ;;  %s2348_s19 = sphi %s2390_s19, %s2971_s19   ;;  %s2344_s18 = sphi %s2388_s18, %s2970_s18  }
   0x3   : > { %p36_p1 = scmp.ge.s32.totalorder %s34_s21, 2  ;;  %p260_p2 = scmp.lt.s32.totalorder %s2352_s20, 3 }
   0x5   : > { %s2973_s21 = smov (%p36_p1, %s34_s21), 0  ;;  %p261_p3 = pnand %p1836_p0, %p260_p2 }
   0x7   : > { %264 = sbr.rel (%p261_p3) target bundleno = 2162 (0x872), region = 40 }
   0xe   : > { %p322_p4 = scmp.lt.s32.totalorder %s2344_s18, 1  ;;  %v2958_v0 = vmov 0   ;;  %vm440_vm0 = vcmask 1043456   ;;  %vm427_vm1 = vcmask 64512   ;;  %v2960_v16 = vmov 0.0  }
   0xf   : > { %482 = vmatprep.mubr.bf16.mxu0 %v2958_v0  ;;  %vm2356_vm2 = vmmov 0   ;;  %v2357_v35 = vmov 0.0|0.0   ;;  %v384_v37 = vlaneseq }
  0x10   : > { %s2975_s18 = smov (!%p322_p4, %s2344_s18), 1 }
  0x11   : > { %s2159_s22 = smul.u32 12, %s2975_s18  ;;  %s1909_s23 = sshll.u32 %s2975_s18, 5  ;;  %v385_v38 = vshrl.u32 %v384_v37, 7 }
  0x12   : > { %s2414_s26 = scalar_lea.vmem %s2952_s0, %s1909_s23  ;;  %s2161_s27 = smul.u32 192, %s2975_s18 }
  0x13   : > { %s339_s30 = scalar_lea.vmem %s2953_s1, %s2159_s22  ;;  %v2192_v1 = vld [vmem:[%s2414_s26] sm:$0xff]   ;;  %v2199_v12 = vld [vmem:[%s2414_s26 + $0x8] sm:$0xff]   ;;  %v2206_v19 = vld [vmem:[%s2414_s26 + $0x10] sm:$0xff]   ;;  %s2160_s9 = smul.u32 3, %s2975_s18  ;;  %v386_v39 = vsub.s32 0, %v385_v38  ;;  %v390_v41 = vsub.s32 1, %v385_v38 }
  0x14   : > { %v380_v2 = vld [vmem:[%s339_s30] sm:$0xff]  ;;  %s2424_s8 = scalar_lea.vmem %s2955_s3, %s2161_s27  ;;  %1990 = vmatprep.mubr.msk.bf16.mxu1 %vm427_vm1, %v2192_v1  ;;  %v2210_v11 = vld [vmem:[%s339_s30 + $0x8] ss:$0 sps:$4 sm:$0xff]   ;;  %v2214_v24 = vld [vmem:[%s2414_s26 + $0x18] sm:$0xff]   ;;  %v394_v45 = vsub.s32 2, %v385_v38  ;;  %s351_s15 = scalar_lea.vmem %s2956_s4, %s2975_s18 }
  0x15   : > { %v1848_v3 = vcombine.high %v380_v2, %v380_v2  ;;  %v1847_v4 = vcombine.low %v380_v2, %v380_v2  ;;  %v2427_v5 = vld [vmem:[%s2424_s8 + $0x4] ss:$12 sps:$4 sm:$0xff]   ;;  %v2433_v7 = vld [vmem:[%s2424_s8] ss:$12 sps:$4 sm:$0xff]   ;;  %v2437_v8 = vld [vmem:[%s2424_s8 + $0x1c] ss:$12 sps:$4 sm:$0xff]   ;;  %2158 = vmatprep.subr.msk.bf16.mxu1 %vm440_vm0, %v2210_v11  ;;  %s343_s12 = scalar_lea.vmem %s2954_s2, %s2160_s9 }
  0x16   : > { %v2442_v9 = vld [vmem:[%s2424_s8 + $0x18] ss:$12 sps:$4 sm:$0xff]   ;;  %v2446_v10 = vld [vmem:[%s2424_s8 + $0x34] ss:$12 sps:$4 sm:$0xff]   ;;  %v448_v13 = vsel %vm440_vm0, %v2210_v11, 0  ;;  %s1910_s16 = sshll.u32 %s2975_s18, 6 }
  0x17   : > { %1850 = vmatprep.subr.msk.bf16.mxu0 %vm440_vm0, %v1848_v3  ;;  %v442_v6 = vsel %vm440_vm0, %v1847_v4, 0  ;;  %v2454_v14 = vld [vmem:[%s2424_s8 + $0x30] ss:$12 sps:$4 sm:$0xff]   ;;  %1989 = vmatpush3.bf16.msra.mxu1 %v448_v13  ;;  %v2458_v15 = vld [vmem:[%s2424_s8 + $0x4c] ss:$12 sps:$4 sm:$0xff]   ;;  %s2655_s23 = scalar_lea.vmem %s2957_s5, %s1910_s16 }
  0x18   : > { %451 = vmatpush1.bf16.msra.mxu0 %v442_v6  ;;  %1998 = vmatprep.subr.bf16.mxu1 %v2960_v16  ;;  %v2462_v17 = vld [vmem:[%s2424_s8 + $0x8] ss:$12 sps:$4 sm:$0xff]   ;;  %v2473_v20 = vld [vmem:[%s2424_s8 + $0x64] ss:$12 sps:$4 sm:$0xff]   ;;  %v2478_v21 = vld [vmem:[%s2424_s8 + $0x20] ss:$12 sps:$4 sm:$0xff]  }
  0x19   : > { %787 = vmatprep.subr.bf16.mxu0 %v2427_v5  ;;  %v2466_v18 = vld [vmem:[%s2424_s8 + $0x48] ss:$12 sps:$4 sm:$0xff]   ;;  %v2481_v22 = vld [vmem:[%s2424_s8 + $0x60] ss:$12 sps:$4 sm:$0xff]   ;;  %v2493_v25 = vld [vmem:[%s2424_s8 + $0x38] ss:$12 sps:$4 sm:$0xff]  }
  0x1a   : > { %1991 = vmatmul.mubr.msk.bf16.vlgmr.msra.gmra.mrb[0].mxu1 %vm427_vm1, %v2199_v12  ;;  %v2486_v23 = vld [vmem:[%s2424_s8 + $0x7c] ss:$12 sps:$4 sm:$0xff]   ;;  %v2500_v26 = vld [vmem:[%s2424_s8 + $0x78] ss:$12 sps:$4 sm:$0xff]   ;;  %v2505_v27 = vld [vmem:[%s2424_s8 + $0x94] ss:$12 sps:$4 sm:$0xff]  }
  0x1b   : > { %1851 = vmatmul.mubr.msk.bf16.vlgmr.msra.gmra.mrb[0].mxu0 %vm427_vm1, %v2192_v1  ;;  %1999 = vmatpush3.bf16.msra.mxu1 %v2462_v17  ;;  %v2509_v28 = vld [vmem:[%s2424_s8 + $0x50] ss:$12 sps:$4 sm:$0xff]   ;;  %v2520_v30 = vld [vmem:[%s2424_s8 + $0xac] ss:$12 sps:$4 sm:$0xff]   ;;  %v2524_v31 = vld [vmem:[%s2424_s8 + $0x68] ss:$12 sps:$4 sm:$0xff]  }
  0x1c   : > { %788 = vmatpush1.bf16.msra.mxu0 %v2433_v7  ;;  %492 = vmatprep.mubr.bf16.mxu0 %v2958_v0  ;;  %v2516_v29 = vld [vmem:[%s2424_s8 + $0x90] ss:$12 sps:$4 sm:$0xff]   ;;  %v2530_v32 = vld [vmem:[%s2424_s8 + $0xa8] ss:$12 sps:$4 sm:$0xff]   ;;  %v2536_v33 = vld [vmem:[%s2424_s8 + $0x80] ss:$12 sps:$4 sm:$0xff]  }
  0x1d   : > { %789 = vmatprep.subr.bf16.mxu0 %v2437_v8  ;;  %2000 = vmatprep.subr.bf16.mxu1 %v2960_v16  ;;  %v2542_v34 = vld [vmem:[%s2424_s8 + $0x98] ss:$12 sps:$4 sm:$0xff]   ;;  %v2550_v36 = vld [vmem:[%s2424_s8 + $0xb0] ss:$12 sps:$4 sm:$0xff]   ;;  %v382_v40 = vld [vmem:[%s343_s12] sm:$0x7] }
  0x1e   : > { %1994 = vmatprep.mubr.msk.bf16.mxu1 %vm427_vm1, %v2206_v19  ;;  %v387_v43 = vrot.slane %v382_v40, %v386_v39  ;;  %v391_v46 = vrot.slane %v382_v40, %v390_v41  ;;  %v2596_v51 = vrot.slane %v382_v40, %v394_v45 }
  0x1f   : > { %2001 = vmatpush3.bf16.msra.mxu1 %v2478_v21 }
  0x20   : > { %790 = vmatpush1.bf16.msra.mxu0 %v2442_v9  ;;  %2002 = vmatprep.subr.bf16.mxu1 %v2960_v16 }
  0x21   : > { %791 = vmatprep.subr.bf16.mxu0 %v2446_v10 }
  0x22   : > { %1995 = vmatmul.mubr.msk.bf16.gmra.mrb[4].mxu1 %vm427_vm1, %v2214_v24 }
  0x23   : > { %1852 = vmatmul.mubr.msk.bf16.gmra.mrb[4].mxu0 %vm427_vm1, %v2199_v12  ;;  %2003 = vmatpush3.bf16.msra.mxu1 %v2493_v25 }
  0x24   : > { %792 = vmatpush1.bf16.msra.mxu0 %v2454_v14  ;;  %502 = vmatprep.mubr.bf16.mxu0 %v2958_v0 }
  0x25   : > { %793 = vmatprep.subr.bf16.mxu0 %v2458_v15  ;;  %2004 = vmatprep.subr.bf16.mxu1 %v2960_v16 }
  0x26   : > { %2014 = vmatprep.mubr.msk.bf16.mxu1 %vm2356_vm2, %v2960_v16 }
  0x27   : > { %2005 = vmatpush3.bf16.msra.mxu1 %v2509_v28 }
  0x28   : > { %794 = vmatpush1.bf16.msra.mxu0 %v2466_v18  ;;  %2006 = vmatprep.subr.bf16.mxu1 %v2960_v16 }
  0x29   : > { %795 = vmatprep.subr.bf16.mxu0 %v2473_v20 }
  0x2b   : > { %1853 = vmatmul.mubr.msk.bf16.gmra.mrb[8].mxu0 %vm427_vm1, %v2206_v19  ;;  %2007 = vmatpush3.bf16.msra.mxu1 %v2524_v31 }
  0x2c   : > { %796 = vmatpush1.bf16.msra.mxu0 %v2481_v22  ;;  %512 = vmatprep.mubr.bf16.mxu0 %v2958_v0 }
  0x2d   : > { %797 = vmatprep.subr.bf16.mxu0 %v2486_v23  ;;  %2008 = vmatprep.subr.bf16.mxu1 %v2960_v16 }
  0x2f   : > { %2009 = vmatpush3.bf16.msra.mxu1 %v2536_v33 }
  0x30   : > { %798 = vmatpush1.bf16.msra.mxu0 %v2500_v26  ;;  %2010 = vmatprep.subr.bf16.mxu1 %v2960_v16 }
  0x31   : > { %799 = vmatprep.subr.bf16.mxu0 %v2505_v27 }
  0x33   : > { %1854 = vmatmul.mubr.msk.bf16.gmra.mrb[12].mxu0 %vm427_vm1, %v2214_v24  ;;  %2011 = vmatpush3.bf16.msra.mxu1 %v2542_v34 }
  0x34   : > { %800 = vmatpush1.bf16.msra.mxu0 %v2516_v29  ;;  %819 = vmatprep.mubr.bf16.mxu0 %v2958_v0 }
  0x35   : > { %801 = vmatprep.subr.bf16.mxu0 %v2520_v30  ;;  %2012 = vmatprep.subr.bf16.mxu1 %v2960_v16 }
  0x37   : > { %2013 = vmatpush3.bf16.msra.mxu1 %v2550_v36 }
  0x38   : > { %802 = vmatpush1.bf16.msra.mxu0 %v2530_v32  ;;  %2018 = vmatprep.subr.bf16.mxu1 %v2960_v16 }
  0x39   : > { %897 = vmatprep.subr.bf16.mxu0 %v2427_v5 }
  0x3a   : > { %2015 = vmatmul.mubr.bf16.vlgmr.msra.gmra.mrb[8].mxu1 %v2357_v35 }
  0x3b   : > { %820 = vmatmul.mubr.bf16.vlgmr.msra.gmra.mrb[16].mxu0 %v2357_v35  ;;  %2019 = vmatpush3.bf16.msra.mxu1 %v2462_v17 }
  0x3c   : > { %898 = vmatpush1.bf16.msra.mxu0 %v2433_v7  ;;  %929 = vmatprep.mubr.bf16.mxu0 %v2958_v0 }
  0x3d   : > { %899 = vmatprep.subr.bf16.mxu0 %v2437_v8  ;;  %2020 = vmatprep.subr.bf16.mxu1 %v2960_v16 }
  0x3e   : > { %2034 = vmatprep.mubr.msk.bf16.mxu1 %vm2356_vm2, %v2960_v16 }
  0x3f   : > { %2021 = vmatpush3.bf16.msra.mxu1 %v2478_v21 }
  0x40   : > { %900 = vmatpush1.bf16.msra.mxu0 %v2442_v9  ;;  %2022 = vmatprep.subr.bf16.mxu1 %v2960_v16 }
  0x41   : > { %901 = vmatprep.subr.bf16.mxu0 %v2446_v10 }
  0x43   : > { %2023 = vmatpush3.bf16.msra.mxu1 %v2493_v25 }
  0x44   : > { %902 = vmatpush1.bf16.msra.mxu0 %v2454_v14  ;;  %2024 = vmatprep.subr.bf16.mxu1 %v2960_v16 }
  0x45   : > { %903 = vmatprep.subr.bf16.mxu0 %v2458_v15 }
  0x47   : > { %2025 = vmatpush3.bf16.msra.mxu1 %v2509_v28 }
  0x48   : > { %904 = vmatpush1.bf16.msra.mxu0 %v2466_v18  ;;  %2026 = vmatprep.subr.bf16.mxu1 %v2960_v16 }
  0x49   : > { %905 = vmatprep.subr.bf16.mxu0 %v2473_v20 }
  0x4b   : > { %2027 = vmatpush3.bf16.msra.mxu1 %v2524_v31 }
  0x4c   : > { %906 = vmatpush1.bf16.msra.mxu0 %v2481_v22  ;;  %2028 = vmatprep.subr.bf16.mxu1 %v2960_v16 }
  0x4d   : > { %907 = vmatprep.subr.bf16.mxu0 %v2486_v23 }
  0x4f   : > { %2029 = vmatpush3.bf16.msra.mxu1 %v2536_v33 }
  0x50   : > { %908 = vmatpush1.bf16.msra.mxu0 %v2500_v26  ;;  %2030 = vmatprep.subr.bf16.mxu1 %v2960_v16 }
  0x51   : > { %909 = vmatprep.subr.bf16.mxu0 %v2505_v27 }
  0x53   : > { %2031 = vmatpush3.bf16.msra.mxu1 %v2542_v34 }
  0x54   : > { %910 = vmatpush1.bf16.msra.mxu0 %v2516_v29  ;;  %2032 = vmatprep.subr.bf16.mxu1 %v2960_v16 }
  0x55   : > { %911 = vmatprep.subr.bf16.mxu0 %v2520_v30 }
  0x57   : > { %2033 = vmatpush3.bf16.msra.mxu1 %v2550_v36 }
  0x58   : > { %912 = vmatpush1.bf16.msra.mxu0 %v2530_v32  ;;  %2038 = vmatprep.subr.bf16.mxu1 %v2960_v16 }
  0x59   : > { %1008 = vmatprep.subr.bf16.mxu0 %v2427_v5 }
  0xed   : > { %v1992_v53 = vpop.f32.mrb[0].mxu1 }
  0xee   : > { %v484_v42 = vpop.f32.mrb[0].mxu0  ;;  %v2601_v56 = vadd.f32 %v1992_v53, %v2596_v51  ;;  %v557_v57 = vpop.f32.mrb[1].mxu1 }
  0xef   : > { %v486_v44 = vpop.f32.mrb[1].mxu0  ;;  %v1993_v60 = vpop.f32.mrb[2].mxu1 }
  0xf0   : > { %v488_v47 = vpop.f32.mrb[2].mxu0  ;;  %v2608_v63 = vadd.f32 %v1993_v60, %v2596_v51  ;;  %v560_v1 = vpop.f32.mrb[3].mxu1 }
  0xf1   : > { %v2592_v48 = vadd.f32 %v488_v47, %v387_v43  ;;  %v490_v49 = vpop.f32.mrb[3].mxu0  ;;  %v2613_v3 = vadd.f32 %v560_v1, %v2596_v51 }
  0xf2   : > { %v2594_v50 = vadd.f32 %v490_v49, %v391_v46 }
  0xf5   : > { %v1996_v6 = vpop.f32.mrb[4].mxu1 }
  0xf6   : > { %v494_v52 = vpop.f32.mrb[4].mxu0  ;;  %v2618_v13 = vadd.f32 %v1996_v6, %v2596_v51  ;;  %v573_v19 = vpop.f32.mrb[5].mxu1  ;;  %v485_v6 = vadd.f32 %v484_v42, %v387_v43  ;;  %v2647_v42 = vld [vmem:[%s351_s15] ss:$0 sm:$0xff] }
  0xf7   : > { %v2598_v54 = vadd.f32 %v494_v52, %v387_v43  ;;  %v496_v55 = vpop.f32.mrb[5].mxu0  ;;  %v2623_v37 = vadd.f32 %v573_v19, %v2596_v51  ;;  %v1997_v38 = vpop.f32.mrb[6].mxu1 }
  0xf8   : > { %v2603_v58 = vadd.f32 %v496_v55, %v391_v46  ;;  %v498_v59 = vpop.f32.mrb[6].mxu0  ;;  %2962 = vst [vmem:[#allocation4_spill] sm:$0xff] %v2618_v13  ;;  %v2628_v41 = vadd.f32 %v1997_v38, %v2596_v51  ;;  %v576_v45 = vpop.f32.mrb[7].mxu1 }
  0xf9   : > { %v2605_v61 = vadd.f32 %v498_v59, %v387_v43  ;;  %v500_v62 = vpop.f32.mrb[7].mxu0  ;;  %v2633_v49 = vadd.f32 %v576_v45, %v2596_v51 }
  0xfa   : > { %v2610_v2 = vadd.f32 %v500_v62, %v391_v46  ;;  %2963 = vst [vmem:[#allocation5_spill] sm:$0xff] %v2628_v41 }
  0xfe   : > { %v504_v4 = vpop.f32.mrb[8].mxu0 }
  0xff   : > { %v2615_v11 = vadd.f32 %v504_v4, %v387_v43  ;;  %v506_v12 = vpop.f32.mrb[9].mxu0 }
 0x100   : > { %v2620_v24 = vadd.f32 %v506_v12, %v391_v46  ;;  %v508_v35 = vpop.f32.mrb[10].mxu0  ;;  %v487_v12 = vadd.f32 %v486_v44, %v391_v46 }
 0x101   : > { %v2625_v39 = vadd.f32 %v508_v35, %v387_v43  ;;  %v510_v40 = vpop.f32.mrb[11].mxu0 }
 0x102   : > { %v2630_v47 = vadd.f32 %v510_v40, %v391_v46 }
 0x106   : > { %v514_v52 = vpop.f32.mrb[12].mxu0 }
 0x107   : > { %v2635_v53 = vadd.f32 %v514_v52, %v387_v43  ;;  %v516_v55 = vpop.f32.mrb[13].mxu0 }
 0x108   : > { %v2637_v59 = vadd.f32 %v516_v55, %v391_v46  ;;  %v518_v60 = vpop.f32.mrb[14].mxu0 }
 0x109   : > { %v2639_v62 = vadd.f32 %v518_v60, %v387_v43  ;;  %v520_v1 = vpop.f32.mrb[15].mxu0 }
 0x10a   : > { %v2641_v4 = vadd.f32 %v520_v1, %v391_v46  ;;  %v558_v46 = vadd.f32 %v557_v57, %v2596_v51  ;;  %v2965_v57 = vmov 0.0  }
 0x10b   : > { %2964 = vst [vmem:[#allocation6_spill] sm:$0xff] %v2639_v62 }
 0x10d   : > { %v862_v16 = vpop.f32.mrb[8].mxu1 }
 0x10e   : > { %v821_v19 = vpop.f32.mrb[16].mxu0  ;;  %v2016_v55 = vpop.f32.mrb[9].mxu1  ;;  %v882_v43 = vadd.f32 %v2647_v42, %v862_v16 }
 0x10f   : > { %v868_v35 = vadd.f32 %v821_v19, %v485_v6  ;;  %v823_v38 = vpop.f32.mrb[17].mxu0  ;;  %v865_v41 = vpop.f32.mrb[10].mxu1 }
 0x110   : > { %v875_v40 = vadd.f32 %v823_v38, %v487_v12  ;;  %v825_v45 = vpop.f32.mrb[18].mxu0  ;;  %v2017_v13 = vpop.f32.mrb[11].mxu1  ;;  %v2966_v38 = vmov 0  }
 0x111   : > { %v1884_v0 = vmul.f32 -1.442695, %v868_v35  ;;  %v826_v52 = vpop.f32.mrb[19].mxu0 }
 0x112   : > { %v1885_v60 = vmul.f32 -1.442695, %v875_v40 }
 0x113   : > { %2229 = vpow2.f32 %v1884_v0 }
 0x114   : > { %2231 = vpow2.f32 %v1885_v60 }
 0x11d   : > { %v2230_v62 = vpop.eup %2229 }
 0x11e   : > { %v872_v1 = vadd.f32 1.0, %v2230_v62  ;;  %v2232_v44 = vpop.eup %2231 }
 0x11f   : > { %v879_v13 = vadd.f32 1.0, %v2232_v44 }
 0x120   : > { %2233 = vrcp.f32 %v872_v1 }
 0x12a   : > { %v2234_v0 = vpop.eup %2233 }
 0x12b   : > { %v883_v41 = vmul.f32 %v2234_v0, %v882_v43 }
 0x12d   : > { %v884_v6 = vadd.f32 %v883_v41, %v558_v46 }
 0x12f   : > { %2235 = vtanh.f32 %v884_v6 }
 0x130   : > { %2237 = vrcp.f32 %v879_v13 }
 0x139   : > { %v2236_v62 = vpop.eup %2235 }
 0x13a   : > { %v886_v12 = vsub.f32 0.0, %v2236_v62  ;;  %v2238_v19 = vpop.eup %2237 }
 0x13c   : > { %v887_v35 = vmul.f32 %v2238_v19, %v886_v12 }
 0x13e   : > { %v2657_v16 = vadd.f32 %v2236_v62, %v887_v35 }
 0x140   : > { %889 = vst [vmem:[%s2655_s23] sm:$0xff] %v2657_v16  ;;  %v896_v51 = vpack.c.bf16 %v2657_v16, %v2657_v16 }
 0x142   : > { %930 = vmatmul.mubr.bf16.vlgmr.msra.gmra.mrb[20].mxu0 %v896_v51  ;;  %2035 = vmatmul.mubr.bf16.vlgmr.msra.gmra.mrb[12].mxu1 %v896_v51 }
 0x143   : > { %1009 = vmatpush1.bf16.msra.mxu0 %v2433_v7  ;;  %2039 = vmatpush3.bf16.msra.mxu1 %v2462_v17 }
 0x144   : > { %1010 = vmatprep.subr.bf16.mxu0 %v2437_v8  ;;  %2040 = vmatprep.subr.bf16.mxu1 %v2965_v57 }
 0x145   : > { %1040 = vmatprep.mubr.bf16.mxu0 %v2966_v38  ;;  %2054 = vmatprep.mubr.msk.bf16.mxu1 %vm2356_vm2, %v2965_v57 }
 0x147   : > { %1011 = vmatpush1.bf16.msra.mxu0 %v2442_v9  ;;  %2041 = vmatpush3.bf16.msra.mxu1 %v2478_v21 }
 0x148   : > { %1012 = vmatprep.subr.bf16.mxu0 %v2446_v10  ;;  %2042 = vmatprep.subr.bf16.mxu1 %v2965_v57 }
 0x14b   : > { %1013 = vmatpush1.bf16.msra.mxu0 %v2454_v14  ;;  %2043 = vmatpush3.bf16.msra.mxu1 %v2493_v25 }
 0x14c   : > { %1014 = vmatprep.subr.bf16.mxu0 %v2458_v15  ;;  %2044 = vmatprep.subr.bf16.mxu1 %v2965_v57 }
 0x14f   : > { %1015 = vmatpush1.bf16.msra.mxu0 %v2466_v18  ;;  %2045 = vmatpush3.bf16.msra.mxu1 %v2509_v28 }
 0x150   : > { %1016 = vmatprep.subr.bf16.mxu0 %v2473_v20  ;;  %2046 = vmatprep.subr.bf16.mxu1 %v2965_v57 }
 0x153   : > { %1017 = vmatpush1.bf16.msra.mxu0 %v2481_v22  ;;  %2047 = vmatpush3.bf16.msra.mxu1 %v2524_v31 }
 0x154   : > { %1018 = vmatprep.subr.bf16.mxu0 %v2486_v23  ;;  %2048 = vmatprep.subr.bf16.mxu1 %v2965_v57 }
 0x157   : > { %1019 = vmatpush1.bf16.msra.mxu0 %v2500_v26  ;;  %2049 = vmatpush3.bf16.msra.mxu1 %v2536_v33 }
 0x158   : > { %1020 = vmatprep.subr.bf16.mxu0 %v2505_v27  ;;  %2050 = vmatprep.subr.bf16.mxu1 %v2965_v57 }
 0x15b   : > { %1021 = vmatpush1.bf16.msra.mxu0 %v2516_v29  ;;  %2051 = vmatpush3.bf16.msra.mxu1 %v2542_v34 }
 0x15c   : > { %1022 = vmatprep.subr.bf16.mxu0 %v2520_v30  ;;  %2052 = vmatprep.subr.bf16.mxu1 %v2965_v57 }
 0x15f   : > { %1023 = vmatpush1.bf16.msra.mxu0 %v2530_v32  ;;  %2053 = vmatpush3.bf16.msra.mxu1 %v2550_v36 }
 0x160   : > { %1119 = vmatprep.subr.bf16.mxu0 %v2427_v5  ;;  %2058 = vmatprep.subr.bf16.mxu1 %v2965_v57 }
 0x215   : > { %v931_v40 = vpop.f32.mrb[20].mxu0  ;;  %v972_v45 = vpop.f32.mrb[12].mxu1 }
 0x216   : > { %v978_v52 = vadd.f32 %v931_v40, %v2592_v48  ;;  %v933_v55 = vpop.f32.mrb[21].mxu0  ;;  %v2036_v60 = vpop.f32.mrb[13].mxu1  ;;  %v992_v19 = vadd.f32 %v2647_v42, %v972_v45 }
 0x217   : > { %v985_v1 = vadd.f32 %v933_v55, %v2594_v50  ;;  %v935_v43 = vpop.f32.mrb[22].mxu0  ;;  %v975_v44 = vpop.f32.mrb[14].mxu1 }
 0x218   : > { %v1886_v0 = vmul.f32 -1.442695, %v978_v52  ;;  %v936_v46 = vpop.f32.mrb[23].mxu0  ;;  %v2037_v41 = vpop.f32.mrb[15].mxu1 }
 0x219   : > { %v1887_v13 = vmul.f32 -1.442695, %v985_v1 }
 0x21a   : > { %2239 = vpow2.f32 %v1886_v0 }
 0x21b   : > { %2241 = vpow2.f32 %v1887_v13 }
 0x224   : > { %v2240_v6 = vpop.eup %2239 }
 0x225   : > { %v982_v62 = vadd.f32 1.0, %v2240_v6  ;;  %v2242_v12 = vpop.eup %2241 }
 0x226   : > { %v989_v50 = vadd.f32 1.0, %v2242_v12 }
 0x227   : > { %2243 = vrcp.f32 %v982_v62 }
 0x231   : > { %v2244_v48 = vpop.eup %2243 }
 0x232   : > { %v993_v35 = vmul.f32 %v2244_v48, %v992_v19 }
 0x234   : > { %v994_v51 = vadd.f32 %v993_v35, %v2613_v3 }
 0x236   : > { %2245 = vtanh.f32 %v994_v51 }
 0x237   : > { %2247 = vrcp.f32 %v989_v50 }
 0x240   : > { %v2246_v40 = vpop.eup %2245 }
 0x241   : > { %v996_v52 = vsub.f32 %v2657_v16, %v2246_v40  ;;  %v2248_v55 = vpop.eup %2247 }
 0x243   : > { %v997_v60 = vmul.f32 %v2248_v55, %v996_v52 }
 0x245   : > { %v2703_v1 = vadd.f32 %v2246_v40, %v997_v60 }
 0x247   : > { %1888 = vst [vmem:[%s2655_s23 + $0x8] sm:$0xff] %v2703_v1  ;;  %v1007_v43 = vpack.c.bf16 %v2703_v1, %v2703_v1 }
 0x249   : > { %1041 = vmatmul.mubr.bf16.vlgmr.msra.gmra.mrb[24].mxu0 %v1007_v43  ;;  %2055 = vmatmul.mubr.bf16.vlgmr.msra.gmra.mrb[16].mxu1 %v1007_v43 }
 0x24a   : > { %1120 = vmatpush1.bf16.msra.mxu0 %v2433_v7  ;;  %2059 = vmatpush3.bf16.msra.mxu1 %v2462_v17 }
 0x24b   : > { %1121 = vmatprep.subr.bf16.mxu0 %v2437_v8  ;;  %2060 = vmatprep.subr.bf16.mxu1 %v2965_v57 }
 0x24c   : > { %1151 = vmatprep.mubr.bf16.mxu0 %v2966_v38  ;;  %2074 = vmatprep.mubr.msk.bf16.mxu1 %vm2356_vm2, %v2965_v57 }
 0x24e   : > { %1122 = vmatpush1.bf16.msra.mxu0 %v2442_v9  ;;  %2061 = vmatpush3.bf16.msra.mxu1 %v2478_v21 }
 0x24f   : > { %1123 = vmatprep.subr.bf16.mxu0 %v2446_v10  ;;  %2062 = vmatprep.subr.bf16.mxu1 %v2965_v57 }
 0x252   : > { %1124 = vmatpush1.bf16.msra.mxu0 %v2454_v14  ;;  %2063 = vmatpush3.bf16.msra.mxu1 %v2493_v25 }
 0x253   : > { %1125 = vmatprep.subr.bf16.mxu0 %v2458_v15  ;;  %2064 = vmatprep.subr.bf16.mxu1 %v2965_v57 }
 0x256   : > { %1126 = vmatpush1.bf16.msra.mxu0 %v2466_v18  ;;  %2065 = vmatpush3.bf16.msra.mxu1 %v2509_v28 }
 0x257   : > { %1127 = vmatprep.subr.bf16.mxu0 %v2473_v20  ;;  %2066 = vmatprep.subr.bf16.mxu1 %v2965_v57 }
 0x25a   : > { %1128 = vmatpush1.bf16.msra.mxu0 %v2481_v22  ;;  %2067 = vmatpush3.bf16.msra.mxu1 %v2524_v31 }
 0x25b   : > { %1129 = vmatprep.subr.bf16.mxu0 %v2486_v23  ;;  %2068 = vmatprep.subr.bf16.mxu1 %v2965_v57 }
 0x25e   : > { %1130 = vmatpush1.bf16.msra.mxu0 %v2500_v26  ;;  %2069 = vmatpush3.bf16.msra.mxu1 %v2536_v33 }
 0x25f   : > { %1131 = vmatprep.subr.bf16.mxu0 %v2505_v27  ;;  %2070 = vmatprep.subr.bf16.mxu1 %v2965_v57 }
 0x262   : > { %1132 = vmatpush1.bf16.msra.mxu0 %v2516_v29  ;;  %2071 = vmatpush3.bf16.msra.mxu1 %v2542_v34 }
 0x263   : > { %1133 = vmatprep.subr.bf16.mxu0 %v2520_v30  ;;  %2072 = vmatprep.subr.bf16.mxu1 %v2965_v57 }
 0x266   : > { %1134 = vmatpush1.bf16.msra.mxu0 %v2530_v32  ;;  %2073 = vmatpush3.bf16.msra.mxu1 %v2550_v36 }
 0x267   : > { %1230 = vmatprep.subr.bf16.mxu0 %v2427_v5  ;;  %2078 = vmatprep.subr.bf16.mxu1 %v2965_v57 }
 0x31c   : > { %v1042_v3 = vpop.f32.mrb[24].mxu0  ;;  %v1083_v16 = vpop.f32.mrb[16].mxu1 }
 0x31d   : > { %v1089_v45 = vadd.f32 %v1042_v3, %v2598_v54  ;;  %v1044_v44 = vpop.f32.mrb[25].mxu0  ;;  %v2056_v0 = vpop.f32.mrb[17].mxu1  ;;  %v1103_v50 = vadd.f32 %v2647_v42, %v1083_v16 }
 0x31e   : > { %v1096_v46 = vadd.f32 %v1044_v44, %v2603_v58  ;;  %v1046_v41 = vpop.f32.mrb[26].mxu0  ;;  %v1086_v13 = vpop.f32.mrb[18].mxu1 }
 0x31f   : > { %v1889_v6 = vmul.f32 -1.442695, %v1089_v45  ;;  %v1047_v62 = vpop.f32.mrb[27].mxu0  ;;  %v2057_v12 = vpop.f32.mrb[19].mxu1 }
 0x320   : > { %v1890_v19 = vmul.f32 -1.442695, %v1096_v46 }
 0x321   : > { %2249 = vpow2.f32 %v1889_v6 }
 0x322   : > { %2251 = vpow2.f32 %v1890_v19 }
 0x32b   : > { %v2250_v48 = vpop.eup %2249 }
 0x32c   : > { %v1093_v35 = vadd.f32 1.0, %v2250_v48  ;;  %v2252_v51 = vpop.eup %2251 }
 0x32d   : > { %v1100_v58 = vadd.f32 1.0, %v2252_v51 }
 0x32e   : > { %2253 = vrcp.f32 %v1093_v35 }
 0x338   : > { %v2254_v54 = vpop.eup %2253 }
 0x339   : > { %v1104_v40 = vmul.f32 %v2254_v54, %v1103_v50 }
 0x33b   : > { %v1105_v52 = vadd.f32 %v1104_v40, %v2601_v56 }
 0x33d   : > { %2255 = vtanh.f32 %v1105_v52 }
 0x33e   : > { %2257 = vrcp.f32 %v1100_v58 }
 0x347   : > { %v2256_v55 = vpop.eup %2255 }
 0x348   : > { %v1107_v60 = vsub.f32 %v2703_v1, %v2256_v55  ;;  %v2258_v43 = vpop.eup %2257 }
 0x34a   : > { %v1108_v3 = vmul.f32 %v2258_v43, %v1107_v60 }
 0x34c   : > { %v2749_v45 = vadd.f32 %v2256_v55, %v1108_v3 }
 0x34e   : > { %1891 = vst [vmem:[%s2655_s23 + $0x10] sm:$0xff] %v2749_v45  ;;  %v1118_v44 = vpack.c.bf16 %v2749_v45, %v2749_v45 }
 0x350   : > { %1152 = vmatmul.mubr.bf16.vlgmr.msra.gmra.mrb[28].mxu0 %v1118_v44  ;;  %2075 = vmatmul.mubr.bf16.vlgmr.msra.gmra.mrb[20].mxu1 %v1118_v44 }
 0x351   : > { %1231 = vmatpush1.bf16.msra.mxu0 %v2433_v7  ;;  %2079 = vmatpush3.bf16.msra.mxu1 %v2462_v17 }
 0x352   : > { %1232 = vmatprep.subr.bf16.mxu0 %v2437_v8  ;;  %2080 = vmatprep.subr.bf16.mxu1 %v2965_v57 }
 0x353   : > { %1262 = vmatprep.mubr.bf16.mxu0 %v2966_v38  ;;  %2094 = vmatprep.mubr.msk.bf16.mxu1 %vm2356_vm2, %v2965_v57 }
 0x355   : > { %1233 = vmatpush1.bf16.msra.mxu0 %v2442_v9  ;;  %2081 = vmatpush3.bf16.msra.mxu1 %v2478_v21 }
 0x356   : > { %1234 = vmatprep.subr.bf16.mxu0 %v2446_v10  ;;  %2082 = vmatprep.subr.bf16.mxu1 %v2965_v57 }
 0x359   : > { %1235 = vmatpush1.bf16.msra.mxu0 %v2454_v14  ;;  %2083 = vmatpush3.bf16.msra.mxu1 %v2493_v25 }
 0x35a   : > { %1236 = vmatprep.subr.bf16.mxu0 %v2458_v15  ;;  %2084 = vmatprep.subr.bf16.mxu1 %v2965_v57 }
 0x35d   : > { %1237 = vmatpush1.bf16.msra.mxu0 %v2466_v18  ;;  %2085 = vmatpush3.bf16.msra.mxu1 %v2509_v28 }
 0x35e   : > { %1238 = vmatprep.subr.bf16.mxu0 %v2473_v20  ;;  %2086 = vmatprep.subr.bf16.mxu1 %v2965_v57 }
 0x361   : > { %1239 = vmatpush1.bf16.msra.mxu0 %v2481_v22  ;;  %2087 = vmatpush3.bf16.msra.mxu1 %v2524_v31 }
 0x362   : > { %1240 = vmatprep.subr.bf16.mxu0 %v2486_v23  ;;  %2088 = vmatprep.subr.bf16.mxu1 %v2965_v57 }
 0x365   : > { %1241 = vmatpush1.bf16.msra.mxu0 %v2500_v26  ;;  %2089 = vmatpush3.bf16.msra.mxu1 %v2536_v33 }
 0x366   : > { %1242 = vmatprep.subr.bf16.mxu0 %v2505_v27  ;;  %2090 = vmatprep.subr.bf16.mxu1 %v2965_v57 }
 0x369   : > { %1243 = vmatpush1.bf16.msra.mxu0 %v2516_v29  ;;  %2091 = vmatpush3.bf16.msra.mxu1 %v2542_v34 }
 0x36a   : > { %1244 = vmatprep.subr.bf16.mxu0 %v2520_v30  ;;  %2092 = vmatprep.subr.bf16.mxu1 %v2965_v57 }
 0x36d   : > { %1245 = vmatpush1.bf16.msra.mxu0 %v2530_v32  ;;  %2093 = vmatpush3.bf16.msra.mxu1 %v2550_v36 }
 0x36e   : > { %1341 = vmatprep.subr.bf16.mxu0 %v2427_v5  ;;  %2098 = vmatprep.subr.bf16.mxu1 %v2965_v57 }
 0x423   : > { %v1153_v56 = vpop.f32.mrb[28].mxu0  ;;  %v1194_v1 = vpop.f32.mrb[20].mxu1 }
 0x424   : > { %v1200_v16 = vadd.f32 %v1153_v56, %v2605_v61  ;;  %v1155_v0 = vpop.f32.mrb[29].mxu0  ;;  %v2076_v46 = vpop.f32.mrb[21].mxu1  ;;  %v1214_v54 = vadd.f32 %v2647_v42, %v1194_v1 }
 0x425   : > { %v1207_v41 = vadd.f32 %v1155_v0, %v2610_v2  ;;  %v1157_v13 = vpop.f32.mrb[30].mxu0  ;;  %v1197_v6 = vpop.f32.mrb[22].mxu1 }
 0x426   : > { %v1892_v62 = vmul.f32 -1.442695, %v1200_v16  ;;  %v1158_v12 = vpop.f32.mrb[31].mxu0  ;;  %v2077_v19 = vpop.f32.mrb[23].mxu1 }
 0x427   : > { %v1893_v48 = vmul.f32 -1.442695, %v1207_v41 }
 0x428   : > { %2259 = vpow2.f32 %v1892_v62 }
 0x429   : > { %2261 = vpow2.f32 %v1893_v48 }
 0x432   : > { %v2260_v35 = vpop.eup %2259 }
 0x433   : > { %v1204_v51 = vadd.f32 1.0, %v2260_v35  ;;  %v2262_v50 = vpop.eup %2261 }
 0x434   : > { %v1211_v2 = vadd.f32 1.0, %v2262_v50 }
 0x435   : > { %2263 = vrcp.f32 %v1204_v51 }
 0x43f   : > { %v2264_v61 = vpop.eup %2263 }
 0x440   : > { %v1215_v40 = vmul.f32 %v2264_v61, %v1214_v54 }
 0x442   : > { %v1216_v52 = vadd.f32 %v1215_v40, %v2608_v63 }
 0x444   : > { %2265 = vtanh.f32 %v1216_v52 }
 0x445   : > { %2267 = vrcp.f32 %v1211_v2  ;;  %v2848_v2 = vld [vmem:[%s2424_s8] ss:$12 sps:$4 sm:$0xff]  }
 0x44e   : > { %v2266_v58 = vpop.eup %2265 }
 0x44f   : > { %v1218_v55 = vsub.f32 %v2749_v45, %v2266_v58  ;;  %v2268_v60 = vpop.eup %2267 }
 0x451   : > { %v1219_v43 = vmul.f32 %v2268_v60, %v1218_v55 }
 0x453   : > { %v2795_v3 = vadd.f32 %v2266_v58, %v1219_v43 }
 0x455   : > { %1894 = vst [vmem:[%s2655_s23 + $0x18] sm:$0xff] %v2795_v3  ;;  %v1229_v44 = vpack.c.bf16 %v2795_v3, %v2795_v3 }
 0x457   : > { %1263 = vmatmul.mubr.bf16.vlgmr.msra.gmra.mrb[32].mxu0 %v1229_v44  ;;  %2095 = vmatmul.mubr.bf16.vlgmr.msra.gmra.mrb[24].mxu1 %v1229_v44 }
 0x458   : > { %1342 = vmatpush1.bf16.msra.mxu0 %v2433_v7  ;;  %2099 = vmatpush3.bf16.msra.mxu1 %v2462_v17 }
 0x459   : > { %1343 = vmatprep.subr.bf16.mxu0 %v2437_v8  ;;  %2100 = vmatprep.subr.bf16.mxu1 %v2965_v57 }
 0x45a   : > { %1373 = vmatprep.mubr.bf16.mxu0 %v2966_v38  ;;  %2114 = vmatprep.mubr.msk.bf16.mxu1 %vm2356_vm2, %v2965_v57 }
 0x45c   : > { %1344 = vmatpush1.bf16.msra.mxu0 %v2442_v9  ;;  %2101 = vmatpush3.bf16.msra.mxu1 %v2478_v21 }
 0x45d   : > { %1345 = vmatprep.subr.bf16.mxu0 %v2446_v10  ;;  %2102 = vmatprep.subr.bf16.mxu1 %v2965_v57 }
 0x460   : > { %1346 = vmatpush1.bf16.msra.mxu0 %v2454_v14  ;;  %2103 = vmatpush3.bf16.msra.mxu1 %v2493_v25 }
 0x461   : > { %1347 = vmatprep.subr.bf16.mxu0 %v2458_v15  ;;  %2104 = vmatprep.subr.bf16.mxu1 %v2965_v57 }
 0x464   : > { %1348 = vmatpush1.bf16.msra.mxu0 %v2466_v18  ;;  %2105 = vmatpush3.bf16.msra.mxu1 %v2509_v28 }
 0x465   : > { %1349 = vmatprep.subr.bf16.mxu0 %v2473_v20  ;;  %2106 = vmatprep.subr.bf16.mxu1 %v2965_v57 }
 0x468   : > { %1350 = vmatpush1.bf16.msra.mxu0 %v2481_v22  ;;  %2107 = vmatpush3.bf16.msra.mxu1 %v2524_v31 }
 0x469   : > { %1351 = vmatprep.subr.bf16.mxu0 %v2486_v23  ;;  %2108 = vmatprep.subr.bf16.mxu1 %v2965_v57 }
 0x46c   : > { %1352 = vmatpush1.bf16.msra.mxu0 %v2500_v26  ;;  %2109 = vmatpush3.bf16.msra.mxu1 %v2536_v33 }
 0x46d   : > { %1353 = vmatprep.subr.bf16.mxu0 %v2505_v27  ;;  %2110 = vmatprep.subr.bf16.mxu1 %v2965_v57 }
 0x470   : > { %1354 = vmatpush1.bf16.msra.mxu0 %v2516_v29  ;;  %2111 = vmatpush3.bf16.msra.mxu1 %v2542_v34 }
 0x471   : > { %1355 = vmatprep.subr.bf16.mxu0 %v2520_v30  ;;  %2112 = vmatprep.subr.bf16.mxu1 %v2965_v57 }
 0x474   : > { %1356 = vmatpush1.bf16.msra.mxu0 %v2530_v32  ;;  %2113 = vmatpush3.bf16.msra.mxu1 %v2550_v36 }
 0x475   : > { %1452 = vmatprep.subr.bf16.mxu0 %v2427_v5  ;;  %2118 = vmatprep.subr.bf16.mxu1 %v2965_v57 }
 0x52a   : > { %v1264_v7 = vpop.f32.mrb[32].mxu0  ;;  %v1305_v8 = vpop.f32.mrb[24].mxu1 }
 0x52b   : > { %v1311_v63 = vadd.f32 %v1264_v7, %v2615_v11  ;;  %v1266_v45 = vpop.f32.mrb[33].mxu0  ;;  %v2096_v56 = vpop.f32.mrb[25].mxu1  ;;  %v1325_v19 = vadd.f32 %v2647_v42, %v1305_v8  ;;  %v2313_v8 = vld [vmem:[%s2424_s8 + $0x18] ss:$12 sps:$4 sm:$0xff]  }
 0x52c   : > { %v1318_v1 = vadd.f32 %v1266_v45, %v2620_v24  ;;  %v1268_v16 = vpop.f32.mrb[34].mxu0  ;;  %v1308_v0 = vpop.f32.mrb[26].mxu1  ;;  %v2315_v45 = vld [vmem:[%s2424_s8 + $0x34] ss:$12 sps:$4 sm:$0xff]   ;;  %v2316_v56 = vld [vmem:[%s2424_s8 + $0x30] ss:$12 sps:$4 sm:$0xff]  }
 0x52d   : > { %v1895_v46 = vmul.f32 -1.442695, %v1311_v63  ;;  %v1269_v41 = vpop.f32.mrb[35].mxu0  ;;  %v2097_v13 = vpop.f32.mrb[27].mxu1  ;;  %v2314_v63 = vld [vmem:[%s2424_s8 + $0x20] ss:$12 sps:$4 sm:$0xff]  }
 0x52e   : > { %v1896_v6 = vmul.f32 -1.442695, %v1318_v1  ;;  %v2317_v1 = vld [vmem:[%s2424_s8 + $0x38] ss:$12 sps:$4 sm:$0xff]   ;;  %v2319_v16 = vld [vmem:[%s2424_s8 + $0x48] ss:$12 sps:$4 sm:$0xff]  }
 0x52f   : > { %2269 = vpow2.f32 %v1895_v46  ;;  %v2320_v0 = vld [vmem:[%s2424_s8 + $0x50] ss:$12 sps:$4 sm:$0xff]   ;;  %v2322_v41 = vld [vmem:[%s2424_s8 + $0x60] ss:$12 sps:$4 sm:$0xff]   ;;  %v2323_v13 = vld [vmem:[%s2424_s8 + $0x68] ss:$12 sps:$4 sm:$0xff]  }
 0x530   : > { %2271 = vpow2.f32 %v1896_v6  ;;  %v2321_v46 = vld [vmem:[%s2424_s8 + $0x64] ss:$12 sps:$4 sm:$0xff]   ;;  %v2324_v6 = vld [vmem:[%s2424_s8 + $0x7c] ss:$12 sps:$4 sm:$0xff]  }
 0x539   : > { %v2270_v62 = vpop.eup %2269 }
 0x53a   : > { %v1315_v12 = vadd.f32 1.0, %v2270_v62  ;;  %v2272_v5 = vpop.eup %2271  ;;  %v2325_v62 = vld [vmem:[%s2424_s8 + $0x78] ss:$12 sps:$4 sm:$0xff]  }
 0x53b   : > { %v1322_v35 = vadd.f32 1.0, %v2272_v5  ;;  %v2327_v5 = vld [vmem:[%s2424_s8 + $0x90] ss:$12 sps:$4 sm:$0xff]  }
 0x53c   : > { %2273 = vrcp.f32 %v1315_v12  ;;  %v2326_v12 = vld [vmem:[%s2424_s8 + $0x94] ss:$12 sps:$4 sm:$0xff]  }
 0x546   : > { %v2274_v11 = vpop.eup %2273 }
 0x547   : > { %v1326_v48 = vmul.f32 %v2274_v11, %v1325_v19  ;;  %v2328_v19 = vld [vmem:[%s2424_s8 + $0xac] ss:$12 sps:$4 sm:$0xff]   ;;  %v2329_v11 = vld [vmem:[%s2424_s8 + $0xa8] ss:$12 sps:$4 sm:$0xff]  }
 0x549   : > { %v1327_v24 = vadd.f32 %v1326_v48, %v2623_v37  ;;  %v2853_v37 = vld [vmem:[%s2424_s8 + $0x1c] ss:$12 sps:$4 sm:$0xff]  }
 0x54b   : > { %2275 = vtanh.f32 %v1327_v24 }
 0x54c   : > { %2277 = vrcp.f32 %v1322_v35 }
 0x555   : > { %v2276_v51 = vpop.eup %2275 }
 0x556   : > { %v1329_v50 = vsub.f32 %v2795_v3, %v2276_v51  ;;  %v2278_v54 = vpop.eup %2277 }
 0x558   : > { %v1330_v61 = vmul.f32 %v2278_v54, %v1329_v50 }
 0x55a   : > { %v2841_v40 = vadd.f32 %v2276_v51, %v1330_v61 }
 0x55c   : > { %1897 = vst [vmem:[%s2655_s23 + $0x20] sm:$0xff] %v2841_v40  ;;  %v1340_v52 = vpack.c.bf16 %v2841_v40, %v2841_v40 }
 0x55e   : > { %1374 = vmatmul.mubr.bf16.vlgmr.msra.gmra.mrb[36].mxu0 %v1340_v52  ;;  %2115 = vmatmul.mubr.bf16.vlgmr.msra.gmra.mrb[28].mxu1 %v1340_v52 }
 0x55f   : > { %1453 = vmatpush1.bf16.msra.mxu0 %v2848_v2  ;;  %2119 = vmatpush3.bf16.msra.mxu1 %v2462_v17 }
 0x560   : > { %1454 = vmatprep.subr.bf16.mxu0 %v2853_v37  ;;  %2120 = vmatprep.subr.bf16.mxu1 %v2965_v57 }
 0x561   : > { %1484 = vmatprep.mubr.bf16.mxu0 %v2966_v38  ;;  %2134 = vmatprep.mubr.msk.bf16.mxu1 %vm2356_vm2, %v2965_v57 }
 0x563   : > { %1455 = vmatpush1.bf16.msra.mxu0 %v2442_v9  ;;  %2121 = vmatpush3.bf16.msra.mxu1 %v2478_v21  ;;  %v2311_v9 = vld [vmem:[%s2424_s8 + $0x4] ss:$12 sps:$4 sm:$0xff]  }
 0x564   : > { %1456 = vmatprep.subr.bf16.mxu0 %v2446_v10  ;;  %2122 = vmatprep.subr.bf16.mxu1 %v2965_v57 }
 0x567   : > { %1457 = vmatpush1.bf16.msra.mxu0 %v2454_v14  ;;  %2123 = vmatpush3.bf16.msra.mxu1 %v2493_v25 }
 0x568   : > { %1458 = vmatprep.subr.bf16.mxu0 %v2458_v15  ;;  %2124 = vmatprep.subr.bf16.mxu1 %v2965_v57 }
 0x56b   : > { %1459 = vmatpush1.bf16.msra.mxu0 %v2466_v18  ;;  %2125 = vmatpush3.bf16.msra.mxu1 %v2509_v28 }
 0x56c   : > { %1460 = vmatprep.subr.bf16.mxu0 %v2473_v20  ;;  %2126 = vmatprep.subr.bf16.mxu1 %v2965_v57 }
 0x56f   : > { %1461 = vmatpush1.bf16.msra.mxu0 %v2481_v22  ;;  %2127 = vmatpush3.bf16.msra.mxu1 %v2524_v31 }
 0x570   : > { %1462 = vmatprep.subr.bf16.mxu0 %v2486_v23  ;;  %2128 = vmatprep.subr.bf16.mxu1 %v2965_v57 }
 0x573   : > { %1463 = vmatpush1.bf16.msra.mxu0 %v2500_v26  ;;  %2129 = vmatpush3.bf16.msra.mxu1 %v2536_v33 }
 0x574   : > { %1464 = vmatprep.subr.bf16.mxu0 %v2505_v27  ;;  %2130 = vmatprep.subr.bf16.mxu1 %v2965_v57 }
 0x577   : > { %1465 = vmatpush1.bf16.msra.mxu0 %v2516_v29  ;;  %2131 = vmatpush3.bf16.msra.mxu1 %v2542_v34 }
 0x578   : > { %1466 = vmatprep.subr.bf16.mxu0 %v2520_v30  ;;  %2132 = vmatprep.subr.bf16.mxu1 %v2965_v57 }
 0x57b   : > { %1467 = vmatpush1.bf16.msra.mxu0 %v2530_v32  ;;  %2133 = vmatpush3.bf16.msra.mxu1 %v2550_v36 }
 0x57c   : > { %1563 = vmatprep.subr.bf16.mxu0 %v2311_v9  ;;  %2138 = vmatprep.subr.bf16.mxu1 %v2965_v57 }
 0x631   : > { %v1375_v10 = vpop.f32.mrb[36].mxu0  ;;  %v1416_v14 = vpop.f32.mrb[28].mxu1 }
 0x632   : > { %v1422_v15 = vadd.f32 %v1375_v10, %v2625_v39  ;;  %v1377_v17 = vpop.f32.mrb[37].mxu0  ;;  %v2116_v18 = vpop.f32.mrb[29].mxu1  ;;  %v1436_v31 = vadd.f32 %v2647_v42, %v1416_v14  ;;  %v2967_v14 = vld [vmem:[#allocation4_spill] sm:$0xff] }
 0x633   : > { %v1429_v20 = vadd.f32 %v1377_v17, %v2630_v47  ;;  %v1379_v21 = vpop.f32.mrb[38].mxu0  ;;  %v1419_v22 = vpop.f32.mrb[30].mxu1 }
 0x634   : > { %v1898_v23 = vmul.f32 -1.442695, %v1422_v15  ;;  %v1380_v25 = vpop.f32.mrb[39].mxu0  ;;  %v2117_v26 = vpop.f32.mrb[31].mxu1 }
 0x635   : > { %v1899_v27 = vmul.f32 -1.442695, %v1429_v20 }
 0x636   : > { %2279 = vpow2.f32 %v1898_v23 }
 0x637   : > { %2281 = vpow2.f32 %v1899_v27  ;;  %v2968_v27 = vld [vmem:[#allocation6_spill] sm:$0xff] }
 0x640   : > { %v2280_v28 = vpop.eup %2279 }
 0x641   : > { %v1426_v29 = vadd.f32 1.0, %v2280_v28  ;;  %v2282_v30 = vpop.eup %2281 }
 0x642   : > { %v1433_v58 = vadd.f32 1.0, %v2282_v30 }
 0x643   : > { %2283 = vrcp.f32 %v1426_v29 }
 0x64d   : > { %v2284_v32 = vpop.eup %2283 }
 0x64e   : > { %v1437_v39 = vmul.f32 %v2284_v32, %v1436_v31 }
 0x650   : > { %v1438_v47 = vadd.f32 %v1437_v39, %v2633_v49  ;;  %v2312_v49 = vld [vmem:[%s2424_s8 + $0x8] ss:$12 sps:$4 sm:$0xff]  }
 0x652   : > { %2285 = vtanh.f32 %v1438_v47 }
 0x653   : > { %2287 = vrcp.f32 %v1433_v58 }
 0x65c   : > { %v2286_v55 = vpop.eup %2285 }
 0x65d   : > { %v1440_v60 = vsub.f32 %v2841_v40, %v2286_v55  ;;  %v2288_v43 = vpop.eup %2287 }
 0x65f   : > { %v1441_v3 = vmul.f32 %v2288_v43, %v1440_v60 }
 0x661   : > { %v2893_v44 = vadd.f32 %v2286_v55, %v1441_v3 }
 0x663   : > { %1900 = vst [vmem:[%s2655_s23 + $0x28] sm:$0xff] %v2893_v44  ;;  %v1451_v7 = vpack.c.bf16 %v2893_v44, %v2893_v44 }
 0x665   : > { %1485 = vmatmul.mubr.bf16.vlgmr.msra.gmra.mrb[40].mxu0 %v1451_v7  ;;  %2135 = vmatmul.mubr.bf16.vlgmr.msra.gmra.mrb[32].mxu1 %v1451_v7 }
 0x666   : > { %1564 = vmatpush1.bf16.msra.mxu0 %v2848_v2  ;;  %2139 = vmatpush3.bf16.msra.mxu1 %v2312_v49 }
 0x667   : > { %1565 = vmatprep.subr.bf16.mxu0 %v2853_v37  ;;  %2140 = vmatprep.subr.bf16.mxu1 %v2965_v57 }
 0x668   : > { %1595 = vmatprep.mubr.bf16.mxu0 %v2966_v38  ;;  %2154 = vmatprep.mubr.msk.bf16.mxu1 %vm2356_vm2, %v2965_v57  ;;  %v2318_v38 = vld [vmem:[%s2424_s8 + $0x4c] ss:$12 sps:$4 sm:$0xff]  }
 0x66a   : > { %1566 = vmatpush1.bf16.msra.mxu0 %v2313_v8  ;;  %2141 = vmatpush3.bf16.msra.mxu1 %v2314_v63  ;;  %v2969_v63 = vld [vmem:[#allocation5_spill] sm:$0xff] }
 0x66b   : > { %1567 = vmatprep.subr.bf16.mxu0 %v2315_v45  ;;  %2142 = vmatprep.subr.bf16.mxu1 %v2965_v57 }
 0x66e   : > { %1568 = vmatpush1.bf16.msra.mxu0 %v2316_v56  ;;  %2143 = vmatpush3.bf16.msra.mxu1 %v2317_v1 }
 0x66f   : > { %1569 = vmatprep.subr.bf16.mxu0 %v2318_v38  ;;  %2144 = vmatprep.subr.bf16.mxu1 %v2965_v57 }
 0x672   : > { %1570 = vmatpush1.bf16.msra.mxu0 %v2319_v16  ;;  %2145 = vmatpush3.bf16.msra.mxu1 %v2320_v0 }
 0x673   : > { %1571 = vmatprep.subr.bf16.mxu0 %v2321_v46  ;;  %2146 = vmatprep.subr.bf16.mxu1 %v2965_v57 }
 0x676   : > { %1572 = vmatpush1.bf16.msra.mxu0 %v2322_v41  ;;  %2147 = vmatpush3.bf16.msra.mxu1 %v2323_v13 }
 0x677   : > { %1573 = vmatprep.subr.bf16.mxu0 %v2324_v6  ;;  %2148 = vmatprep.subr.bf16.mxu1 %v2965_v57 }
 0x67a   : > { %1574 = vmatpush1.bf16.msra.mxu0 %v2325_v62  ;;  %2149 = vmatpush3.bf16.msra.mxu1 %v2536_v33 }
 0x67b   : > { %1575 = vmatprep.subr.bf16.mxu0 %v2326_v12  ;;  %2150 = vmatprep.subr.bf16.mxu1 %v2965_v57 }
 0x67e   : > { %1576 = vmatpush1.bf16.msra.mxu0 %v2327_v5  ;;  %2151 = vmatpush3.bf16.msra.mxu1 %v2542_v34 }
 0x67f   : > { %1577 = vmatprep.subr.bf16.mxu0 %v2328_v19  ;;  %2152 = vmatprep.subr.bf16.mxu1 %v2965_v57 }
 0x682   : > { %1578 = vmatpush1.bf16.msra.mxu0 %v2329_v11  ;;  %2153 = vmatpush3.bf16.msra.mxu1 %v2550_v36 }
 0x738   : > { %v1486_v48 = vpop.f32.mrb[40].mxu0  ;;  %v1527_v24 = vpop.f32.mrb[32].mxu1 }
 0x739   : > { %v1533_v33 = vadd.f32 %v1486_v48, %v2635_v53  ;;  %v1488_v35 = vpop.f32.mrb[41].mxu0  ;;  %v2136_v51 = vpop.f32.mrb[33].mxu1  ;;  %v1547_v9 = vadd.f32 %v2647_v42, %v1527_v24 }
 0x73a   : > { %v1540_v50 = vadd.f32 %v1488_v35, %v2637_v59  ;;  %v1490_v54 = vpop.f32.mrb[42].mxu0  ;;  %v1530_v61 = vpop.f32.mrb[34].mxu1 }
 0x73b   : > { %v1901_v40 = vmul.f32 -1.442695, %v1533_v33  ;;  %v1491_v34 = vpop.f32.mrb[43].mxu0  ;;  %v2137_v52 = vpop.f32.mrb[35].mxu1 }
 0x73c   : > { %v1902_v2 = vmul.f32 -1.442695, %v1540_v50 }
 0x73d   : > { %2289 = vpow2.f32 %v1901_v40 }
 0x73e   : > { %2291 = vpow2.f32 %v1902_v2 }
 0x747   : > { %v2290_v57 = vpop.eup %2289 }
 0x748   : > { %v1537_v37 = vadd.f32 1.0, %v2290_v57  ;;  %v2292_v36 = vpop.eup %2291 }
 0x749   : > { %v1544_v59 = vadd.f32 1.0, %v2292_v36 }
 0x74a   : > { %2293 = vrcp.f32 %v1537_v37 }
 0x754   : > { %v2294_v53 = vpop.eup %2293 }
 0x755   : > { %v1548_v10 = vmul.f32 %v2294_v53, %v1547_v9 }
 0x757   : > { %v1549_v15 = vadd.f32 %v1548_v10, %v2967_v14 }
 0x759   : > { %2295 = vtanh.f32 %v1549_v15 }
 0x75a   : > { %2297 = vrcp.f32 %v1544_v59 }
 0x763   : > { %v2296_v17 = vpop.eup %2295 }
 0x764   : > { %v1551_v18 = vsub.f32 %v2893_v44, %v2296_v17  ;;  %v2298_v20 = vpop.eup %2297 }
 0x766   : > { %v1552_v21 = vmul.f32 %v2298_v20, %v1551_v18 }
 0x768   : > { %v1553_v22 = vadd.f32 %v2296_v17, %v1552_v21 }
 0x76a   : > { %1903 = vst [vmem:[%s2655_s23 + $0x30] sm:$0xff] %v1553_v22  ;;  %v1562_v23 = vpack.c.bf16 %v1553_v22, %v1553_v22 }
 0x76c   : > { %1596 = vmatmul.mubr.bf16.vlgmr.msra.gmra.mrb[44].mxu0 %v1562_v23  ;;  %2155 = vmatmul.mubr.bf16.vlgmr.msra.gmra.mrb[36].mxu1 %v1562_v23 }
 0x83f   : > { %v1597_v25 = vpop.f32.mrb[44].mxu0  ;;  %v1638_v26 = vpop.f32.mrb[36].mxu1 }
 0x840   : > { %v1644_v28 = vadd.f32 %v1597_v25, %v2968_v27  ;;  %v1599_v29 = vpop.f32.mrb[45].mxu0  ;;  %v2156_v30 = vpop.f32.mrb[37].mxu1  ;;  %v1658_v7 = vadd.f32 %v2647_v42, %v1638_v26 }
 0x841   : > { %v1651_v31 = vadd.f32 %v1599_v29, %v2641_v4  ;;  %v1601_v32 = vpop.f32.mrb[46].mxu0  ;;  %v1641_v39 = vpop.f32.mrb[38].mxu1 }
 0x842   : > { %v1904_v47 = vmul.f32 -1.442695, %v1644_v28  ;;  %v1602_v58 = vpop.f32.mrb[47].mxu0  ;;  %v2157_v55 = vpop.f32.mrb[39].mxu1 }
 0x843   : > { %v1905_v60 = vmul.f32 -1.442695, %v1651_v31 }
 0x844   : > { %2299 = vpow2.f32 %v1904_v47 }
 0x845   : > { %2301 = vpow2.f32 %v1905_v60 }
 0x84e   : > { %v2300_v43 = vpop.eup %2299 }
 0x84f   : > { %v1648_v3 = vadd.f32 1.0, %v2300_v43  ;;  %v2302_v44 = vpop.eup %2301 }
 0x850   : > { %v1655_v4 = vadd.f32 1.0, %v2302_v44 }
 0x851   : > { %2303 = vrcp.f32 %v1648_v3 }
 0x85b   : > { %v2304_v49 = vpop.eup %2303 }
 0x85c   : > { %v1659_v8 = vmul.f32 %v2304_v49, %v1658_v7 }
 0x85e   : > { %v1660_v45 = vadd.f32 %v1659_v8, %v2969_v63 }
 0x860   : > { %2305 = vtanh.f32 %v1660_v45 }
 0x861   : > { %2307 = vrcp.f32 %v1655_v4 }
 0x86a   : > { %v2306_v56 = vpop.eup %2305 }
 0x86b   : > { %v1662_v1 = vsub.f32 %v1553_v22, %v2306_v56  ;;  %v2308_v38 = vpop.eup %2307 }
 0x86d   : > { %v1663_v16 = vmul.f32 %v2308_v38, %v1662_v1 }
 0x86f   : > { %v1664_v0 = vadd.f32 %v2306_v56, %v1663_v16 }
 0x871   : > { %1906 = vst [vmem:[%s2655_s23 + $0x38] sm:$0xff] %v1664_v0 }
 0x872 PF: > { %s15_s20 = sadd.s32 1, %s2352_s20   ;;  %s2970_s18 = smov %s2348_s19 }
 0x873   : > { %p12_p5 = scmp.ge.s32.totalorder %s15_s20, 4   ;;  %s2971_s19 = smov %s2973_s21 }
 0x875   :  { %14 = sbr.rel (!%p12_p5) target bundleno = 2 (0x2), region = 101 }

</bundles_post_ra>
